<compile_context>
chip_gen: v7x
topology: tpu7x:2x2x1
jax: 0.10.0
libtpu: 0.0.40
codegen_flags: <defaults>
</compile_context>

<pallas_src>
import jax
import jax.numpy as jnp
import numpy as np
from jax.experimental import pallas as pl
from jax.experimental.pallas import tpu as pltpu

EPS = 1e-5                      # nn.InstanceNorm2d default eps
COMPUTE_DTYPE = jnp.float32     # set to jnp.bfloat16 on v6e/v7x (f32 MXU accumulation
                                # and f32 norm stats are kept); loosen test tol to ~2e-2.

# ConvTranspose2d(k=5, s=2, p=2, op=1): kernel-row index used by output-row parity r
# when the padded-input row offset is d_r = r + a.
_ROW_TAPS = {0: (4, 2, 0), 1: (3, 1)}
# 3x3 conv (s=1, p=1) in parity space: for (output-row parity r, input-row parity a),
# map padded-plane row offset e (= du + 1) -> kernel row ky.
_TAP2 = {(0, 0): {1: 1}, (0, 1): {0: 0, 1: 2}, (1, 0): {1: 0, 2: 2}, (1, 1): {1: 1}}
# plane-row offsets (du + 1) ever needed from an input plane of row parity a
_E = {0: (1, 2), 1: (0, 1)}


def _round_up(v, m):
    return (v + m - 1) // m * m


def _build_w1(wt, cin_p, cout_p):
    """Padded ConvTranspose weight (cin_p, cout_p, 5, 5) -> (4*cout_p, 9*cin_p).

    Row block P = 2*r + s is output parity (r, s); column block T = 3*d_r + d_c
    multiplies the (d_r, d_c)-shifted slab of the padded flat input."""
    zero = jnp.zeros((cout_p, cin_p), wt.dtype)
    rows = []
    for r in (0, 1):
        for s in (0, 1):
            blocks = []
            for d_r in range(3):
                for d_c in range(3):
                    a, b = d_r - r, d_c - s
                    if 0 <= a < len(_ROW_TAPS[r]) and 0 <= b < len(_ROW_TAPS[s]):
                        kh, kw = _ROW_TAPS[r][a], _ROW_TAPS[s][b]
                        blocks.append(wt[:, :, kh, kw].T)          # (Cout, Cin)
                    else:
                        blocks.append(zero)
            rows.append(jnp.concatenate(blocks, axis=1))
    return jnp.concatenate(rows, axis=0)


def _build_w2(w_y, w_s, cout_p):
    """3x3-conv halves (cout_p, cout_p, 3, 3) -> (4*cout_p, 32*cout_p) polyphase matrix.

    Column blocks enumerate (input parity a,b) x (plane shifts e_r,e_c) x (y, skip),
    matching the im2col layout built inside the kernel; missing taps are zero."""
    zero = jnp.zeros((cout_p, cout_p), w_y.dtype)
    rows = []
    for r in (0, 1):
        for s in (0, 1):
            blocks = []
            for a in (0, 1):
                for b in (0, 1):
                    for e_r in _E[a]:
                        for e_c in _E[b]:
                            ky = _TAP2[(r, a)].get(e_r)
                            kx = _TAP2[(s, b)].get(e_c)
                            for wh in (w_y, w_s):
                                if ky is None or kx is None:
                                    blocks.append(zero)
                                else:
                                    blocks.append(wh[:, :, ky, kx])  # (Cout, Cout)
            rows.append(jnp.concatenate(blocks, axis=1))
    return jnp.concatenate(rows, axis=0)


def _make_uu2d_kernel(cin_p, cout_p, w2r, l1p, lo, inv_count):
    n_c = cout_p

    def kernel(xf_ref, sk_ref, w1_ref, w2_ref, mask_ref, o_ref, col1, ybuf, col2):
        # ---- stage 1: polyphase ConvTranspose2d as ONE (4C, 9Cin)@(9Cin, L1) dot ----
        # Each of the 9 distinct shifted slabs is copied exactly once into the im2col
        # scratch (8-row aligned blocks thanks to channel padding).
        for t in range(9):
            d_r, d_c = divmod(t, 3)
            sft = d_r * w2r + d_c
            col1[t * cin_p:(t + 1) * cin_p, :] = xf_ref[0, :, sft:sft + l1p]
        acc = jnp.dot(w1_ref[...], col1[...],
                      preferred_element_type=jnp.float32)          # (4C, L1) f32

        # ---- fused InstanceNorm2d + ReLU: single-pass masked stats, biased var ----
        m = mask_ref[0]                                            # (1, L1) 0/1 mask
        am = acc * m
        s1 = jnp.sum(am, axis=1, keepdims=True)                    # (4C, 1)
        s2 = jnp.sum(am * am, axis=1, keepdims=True)
        s1 = s1[0:n_c] + s1[n_c:2 * n_c] + s1[2 * n_c:3 * n_c] + s1[3 * n_c:4 * n_c]
        s2 = s2[0:n_c] + s2[n_c:2 * n_c] + s2[2 * n_c:3 * n_c] + s2[3 * n_c:4 * n_c]
        mean = s1 * inv_count                                      # (C, 1)
        var = s2 * inv_count - mean * mean
        scale = jax.lax.rsqrt(var + EPS)
        mean4 = jnp.concatenate([mean] * 4, axis=0)                # (4C, 1)
        scale4 = jnp.concatenate([scale] * 4, axis=0)
        yn = jnp.maximum((am - mean4) * scale4, 0.0) * m           # pads zeroed

        # Zero-padded parity-plane layout in VMEM: the zero ring doubles as the 3x3
        # conv's zero padding, so stage 2 reads it with plain static shifts.
        ybuf[...] = jnp.zeros_like(ybuf)
        ybuf[:, 0:l1p] = yn.astype(ybuf.dtype)

        # ---- stage 2: polyphase Conv2d(2C->C, 3x3) as ONE (4C, 32C)@(32C, Lo) dot ----
        # im2col over the y parity planes (VMEM scratch) and skip parity planes
        # (input block); the channel concat is just adjacent K blocks.
        kblk = 0
        for a in (0, 1):
            for b in (0, 1):
                r0 = (2 * a + b) * n_c
                for e_r in _E[a]:
                    for e_c in _E[b]:
                        sft = e_r * w2r + e_c
                        col2[kblk * n_c:(kblk + 1) * n_c, :] = \
                            ybuf[r0:r0 + n_c, sft:sft + lo]
                        kblk += 1
                        col2[kblk * n_c:(kblk + 1) * n_c, :] = \
                            sk_ref[0, r0:r0 + n_c, sft:sft + lo]
                        kblk += 1
        out = jnp.dot(w2_ref[...], col2[...],
                      preferred_element_type=jnp.float32)          # (4C, Lo)
        o_ref[0, :, :] = out.astype(o_ref.dtype)

    return kernel


def uu2d_forward(x, skip, w_convt, w_conv, compute_dtype=COMPUTE_DTYPE):
    """
    x:        (N, Cin, H, W)
    skip:     (N, Cout, 2H, 2W)
    w_convt:  (Cin, Cout, 5, 5)     PyTorch ConvTranspose2d weight layout
    w_conv:   (Cout, 2*Cout, 3, 3)  PyTorch Conv2d weight layout
    returns:  (N, Cout, 2H, 2W)
    """
    n, cin, h, w = x.shape
    cout = w_convt.shape[1]
    assert skip.shape == (n, cout, 2 * h, 2 * w)
    cin_p = _round_up(cin, 8)        # sublane-aligned im2col row blocks
    cout_p = _round_up(cout, 8)

    w2r = w + 2                      # row stride of every padded (H+2)x(W+2) plane
    s_pad = (h + 2) * w2r            # flat length of one padded plane
    l1p = (h + 1) * w2r              # stage-1 compute width (top pad row + H rows)
    lo = _round_up(h * w2r, 128)     # lane-dense stage-2 / output width
    lx = _round_up(2 * w2r + 2 + l1p, 128)   # covers max shift + compute width
    lp = _round_up(2 * w2r + 2 + lo, 128)
    out_dtype = x.dtype
    # TODO(synk): for per-batch images too large for VMEM (esp. v7x's 64 MiB) add halo
    #             row-tiling of the flat-spatial axis + an explicit vmem_limit_bytes.

    # ---- host-side prep (one cheap XLA pass per tensor) ----
    # x: pad channels to a sublane multiple, zero ring, flatten; the (W2+1)-lane front
    # pad places each parity output at flat index (u+1)*W2 + (v+1) (padded layout).
    xp = jnp.pad(x, ((0, 0), (0, cin_p - cin), (1, 1), (1, 1)))
    xf = jnp.pad(xp.reshape(n, cin_p, s_pad),
                 ((0, 0), (0, 0), (w2r + 1, lx - (w2r + 1) - s_pad))).astype(compute_dtype)

    # skip: split into the 4 sub-pixel parity planes, zero ring (= 3x3 conv padding),
    # flatten, stack on channels.
    skp = jnp.pad(skip, ((0, 0), (0, cout_p - cout), (0, 0), (0, 0)))
    planes = []
    for a in (0, 1):
        for b in (0, 1):
            p = jnp.pad(skp[:, :, a::2, b::2], ((0, 0), (0, 0), (1, 1), (1, 1)))
            planes.append(p.reshape(n, cout_p, s_pad))
    skf = jnp.pad(jnp.concatenate(planes, axis=1),
                  ((0, 0), (0, 0), (0, lp - s_pad))).astype(compute_dtype)

    wt_p = jnp.pad(w_convt, ((0, cin_p - cin), (0, cout_p - cout), (0, 0), (0, 0)))
    w_y = jnp.pad(w_conv[:, :cout], ((0, cout_p - cout), (0, cout_p - cout), (0, 0), (0, 0)))
    w_s = jnp.pad(w_conv[:, cout:], ((0, cout_p - cout), (0, cout_p - cout), (0, 0), (0, 0)))
    w1 = _build_w1(wt_p, cin_p, cout_p).astype(compute_dtype)      # (4C, 9*Cin_p)
    w2 = _build_w2(w_y, w_s, cout_p).astype(compute_dtype)         # (4C, 32*C)

    # 0/1 mask of valid lanes of the stage-1 result (excludes pad rows/cols).
    idx = np.arange(l1p)
    valid = (idx >= w2r) & (idx % w2r >= 1) & (idx % w2r <= w)
    mask = jnp.asarray(valid.astype(np.float32))[None, None, :]    # (1, 1, L1)

    kernel = _make_uu2d_kernel(cin_p, cout_p, w2r, l1p, lo, 1.0 / float(4 * h * w))

    out = pl.pallas_call(
        kernel,
        out_shape=jax.ShapeDtypeStruct((n, 4 * cout_p, lo), out_dtype),
        grid=(n,),
        in_specs=[
            pl.BlockSpec((1, cin_p, lx), lambda i: (i, 0, 0)),
            pl.BlockSpec((1, 4 * cout_p, lp), lambda i: (i, 0, 0)),
            pl.BlockSpec((4 * cout_p, 9 * cin_p), lambda i: (0, 0)),
            pl.BlockSpec((4 * cout_p, 32 * cout_p), lambda i: (0, 0)),
            pl.BlockSpec((1, 1, l1p), lambda i: (0, 0, 0)),
        ],
        out_specs=pl.BlockSpec((1, 4 * cout_p, lo), lambda i: (i, 0, 0)),
        scratch_shapes=[
            pltpu.VMEM((9 * cin_p, l1p), compute_dtype),    # stage-1 im2col slabs
            pltpu.VMEM((4 * cout_p, lp), compute_dtype),    # padded y parity planes
            pltpu.VMEM((32 * cout_p, lo), compute_dtype),   # stage-2 im2col slabs
        ],
        compiler_params=pltpu.CompilerParams(dimension_semantics=("parallel",)),
        # TODO(synk): on v7x (2 TensorCores) add a second parallel grid axis (e.g.
        #             stage-2 row tiles) so small batch counts still fill both cores.
    )(xf, skf, w1, w2, mask)

    # ---- final sub-pixel interleave + crop (single XLA pass over the output) ----
    out = out[:, :, :h * w2r].reshape(n, 2, 2, cout_p, h, w2r)
    out = out[:, :, :, :cout, :, :w]
    return out.transpose(0, 3, 4, 1, 5, 2).reshape(n, cout, 2 * h, 2 * w)


# ---------------------------------------------------------------------------
# Pure-JAX reference (lax convs) for correctness check
# ---------------------------------------------------------------------------
def uu2d_reference(x, skip, w_convt, w_conv):
    w_eq = jnp.flip(w_convt, (2, 3)).transpose(1, 0, 2, 3)          # (Cout, Cin, 5, 5)
    up = jax.lax.conv_general_dilated(
        x, w_eq, window_strides=(1, 1), padding=((2, 3), (2, 3)),
        lhs_dilation=(2, 2), dimension_numbers=('NCHW', 'OIHW', 'NCHW'))
    mean = up.mean(axis=(2, 3), keepdims=True)
    var = jnp.square(up - mean).mean(axis=(2, 3), keepdims=True)
    y = jnp.maximum((up - mean) * jax.lax.rsqrt(var + EPS), 0.0)
    cat = jnp.concatenate([y, skip], axis=1)
    return jax.lax.conv_general_dilated(
        cat, w_conv, window_strides=(1, 1), padding=((1, 1), (1, 1)),
        dimension_numbers=('NCHW', 'OIHW', 'NCHW'))


if __name__ == "__main__":
    n, cin, cout, h, w = 2, 4, 8, 16, 16
    key = jax.random.PRNGKey(0)
    kx, ks, kwt, kwc = jax.random.split(key, 4)

    x = jax.random.normal(kx, (n, cin, h, w), jnp.float32)
    skip = jax.random.normal(ks, (n, cout, 2 * h, 2 * w), jnp.float32)
    w_convt = 0.1 * jax.random.normal(kwt, (cin, cout, 5, 5), jnp.float32)
    w_conv = 0.1 * jax.random.normal(kwc, (cout, 2 * cout, 3, 3), jnp.float32)

    fwd = jax.jit(uu2d_forward)
    out = jax.block_until_ready(fwd(x, skip, w_convt, w_conv))
    ref = jax.block_until_ready(uu2d_reference(x, skip, w_convt, w_conv))

    assert out.shape == (n, cout, 2 * h, 2 * w), out.shape
    np.testing.assert_allclose(np.asarray(out), np.asarray(ref), rtol=2e-4, atol=2e-4)
    print("KERNEL_OK")
</pallas_src>

<mosaic_0001>
module attributes {stable_mosaic.version = 11 : i64} {
  func.func @kernel(%arg0: i32, %arg1: memref<1x8x384xf32, #tpu.memory_space<vmem>>, %arg2: memref<1x32x512xf32, #tpu.memory_space<vmem>>, %arg3: memref<32x72xf32, #tpu.memory_space<vmem>>, %arg4: memref<32x256xf32, #tpu.memory_space<vmem>>, %arg5: memref<1x1x306xf32, #tpu.memory_space<vmem>>, %arg6: memref<1x32x384xf32, #tpu.memory_space<vmem>>, %arg7: memref<72x306xf32, #tpu.memory_space<vmem>>, %arg8: memref<32x512xf32, #tpu.memory_space<vmem>>, %arg9: memref<256x384xf32, #tpu.memory_space<vmem>>) attributes {dimension_semantics = [#tpu.dimension_semantics<parallel>], iteration_bounds = array<i64: 2>, scalar_prefetch = 0 : i64, scratch_operands = 3 : i64, tpu.core_type = #tpu.core_type<tc>, window_params = [{transform_indices = @transform_0, window_bounds = array<i64: 1, 8, 384>}, {transform_indices = @transform_1, window_bounds = array<i64: 1, 32, 512>}, {pipeline_mode = #tpu.pipeline_mode<synchronous>, transform_indices = @transform_2, window_bounds = array<i64: 32, 72>}, {pipeline_mode = #tpu.pipeline_mode<synchronous>, transform_indices = @transform_3, window_bounds = array<i64: 32, 256>}, {pipeline_mode = #tpu.pipeline_mode<synchronous>, transform_indices = @transform_4, window_bounds = array<i64: 1, 1, 306>}, {transform_indices = @transform_5, window_bounds = array<i64: 1, 32, 384>}]} {
    %c0 = arith.constant 0 : index
    %c0_0 = arith.constant 0 : index
    %c0_1 = arith.constant 0 : index
    %0 = vector.load %arg1[%c0, %c0_0, %c0_1] : memref<1x8x384xf32, #tpu.memory_space<vmem>>, vector<1x8x306xf32>
    %1 = vector.shape_cast %0 : vector<1x8x306xf32> to vector<8x306xf32>
    %c0_2 = arith.constant 0 : index
    %c0_3 = arith.constant 0 : index
    %2 = vector.load %arg7[%c0_2, %c0_3] : memref<72x306xf32, #tpu.memory_space<vmem>>, vector<8x306xf32>
    tpu.vector_store %arg7[%c0_2, %c0_3], %1 {strides = array<i32>} : memref<72x306xf32, #tpu.memory_space<vmem>>, vector<8x306xf32>,
    %c0_4 = arith.constant 0 : index
    %c0_5 = arith.constant 0 : index
    %c1 = arith.constant 1 : index
    %3 = vector.load %arg1[%c0_4, %c0_5, %c1] : memref<1x8x384xf32, #tpu.memory_space<vmem>>, vector<1x8x306xf32>
    %4 = vector.shape_cast %3 : vector<1x8x306xf32> to vector<8x306xf32>
    %c8 = arith.constant 8 : index
    %c0_6 = arith.constant 0 : index
    %5 = vector.load %arg7[%c8, %c0_6] : memref<72x306xf32, #tpu.memory_space<vmem>>, vector<8x306xf32>
    tpu.vector_store %arg7[%c8, %c0_6], %4 {strides = array<i32>} : memref<72x306xf32, #tpu.memory_space<vmem>>, vector<8x306xf32>,
    %c0_7 = arith.constant 0 : index
    %c0_8 = arith.constant 0 : index
    %c2 = arith.constant 2 : index
    %6 = vector.load %arg1[%c0_7, %c0_8, %c2] : memref<1x8x384xf32, #tpu.memory_space<vmem>>, vector<1x8x306xf32>
    %7 = vector.shape_cast %6 : vector<1x8x306xf32> to vector<8x306xf32>
    %c16 = arith.constant 16 : index
    %c0_9 = arith.constant 0 : index
    %8 = vector.load %arg7[%c16, %c0_9] : memref<72x306xf32, #tpu.memory_space<vmem>>, vector<8x306xf32>
    tpu.vector_store %arg7[%c16, %c0_9], %7 {strides = array<i32>} : memref<72x306xf32, #tpu.memory_space<vmem>>, vector<8x306xf32>,
    %c0_10 = arith.constant 0 : index
    %c0_11 = arith.constant 0 : index
    %c18 = arith.constant 18 : index
    %9 = vector.load %arg1[%c0_10, %c0_11, %c18] : memref<1x8x384xf32, #tpu.memory_space<vmem>>, vector<1x8x306xf32>
    %10 = vector.shape_cast %9 : vector<1x8x306xf32> to vector<8x306xf32>
    %c24 = arith.constant 24 : index
    %c0_12 = arith.constant 0 : index
    %11 = vector.load %arg7[%c24, %c0_12] : memref<72x306xf32, #tpu.memory_space<vmem>>, vector<8x306xf32>
    tpu.vector_store %arg7[%c24, %c0_12], %10 {strides = array<i32>} : memref<72x306xf32, #tpu.memory_space<vmem>>, vector<8x306xf32>,
    %c0_13 = arith.constant 0 : index
    %c0_14 = arith.constant 0 : index
    %c19 = arith.constant 19 : index
    %12 = vector.load %arg1[%c0_13, %c0_14, %c19] : memref<1x8x384xf32, #tpu.memory_space<vmem>>, vector<1x8x306xf32>
    %13 = vector.shape_cast %12 : vector<1x8x306xf32> to vector<8x306xf32>
    %c32 = arith.constant 32 : index
    %c0_15 = arith.constant 0 : index
    %14 = vector.load %arg7[%c32, %c0_15] : memref<72x306xf32, #tpu.memory_space<vmem>>, vector<8x306xf32>
    tpu.vector_store %arg7[%c32, %c0_15], %13 {strides = array<i32>} : memref<72x306xf32, #tpu.memory_space<vmem>>, vector<8x306xf32>,
    %c0_16 = arith.constant 0 : index
    %c0_17 = arith.constant 0 : index
    %c20 = arith.constant 20 : index
    %15 = vector.load %arg1[%c0_16, %c0_17, %c20] : memref<1x8x384xf32, #tpu.memory_space<vmem>>, vector<1x8x306xf32>
    %16 = vector.shape_cast %15 : vector<1x8x306xf32> to vector<8x306xf32>
    %c40 = arith.constant 40 : index
    %c0_18 = arith.constant 0 : index
    %17 = vector.load %arg7[%c40, %c0_18] : memref<72x306xf32, #tpu.memory_space<vmem>>, vector<8x306xf32>
    tpu.vector_store %arg7[%c40, %c0_18], %16 {strides = array<i32>} : memref<72x306xf32, #tpu.memory_space<vmem>>, vector<8x306xf32>,
    %c0_19 = arith.constant 0 : index
    %c0_20 = arith.constant 0 : index
    %c36 = arith.constant 36 : index
    %18 = vector.load %arg1[%c0_19, %c0_20, %c36] : memref<1x8x384xf32, #tpu.memory_space<vmem>>, vector<1x8x306xf32>
    %19 = vector.shape_cast %18 : vector<1x8x306xf32> to vector<8x306xf32>
    %c48 = arith.constant 48 : index
    %c0_21 = arith.constant 0 : index
    %20 = vector.load %arg7[%c48, %c0_21] : memref<72x306xf32, #tpu.memory_space<vmem>>, vector<8x306xf32>
    tpu.vector_store %arg7[%c48, %c0_21], %19 {strides = array<i32>} : memref<72x306xf32, #tpu.memory_space<vmem>>, vector<8x306xf32>,
    %c0_22 = arith.constant 0 : index
    %c0_23 = arith.constant 0 : index
    %c37 = arith.constant 37 : index
    %21 = vector.load %arg1[%c0_22, %c0_23, %c37] : memref<1x8x384xf32, #tpu.memory_space<vmem>>, vector<1x8x306xf32>
    %22 = vector.shape_cast %21 : vector<1x8x306xf32> to vector<8x306xf32>
    %c56 = arith.constant 56 : index
    %c0_24 = arith.constant 0 : index
    %23 = vector.load %arg7[%c56, %c0_24] : memref<72x306xf32, #tpu.memory_space<vmem>>, vector<8x306xf32>
    tpu.vector_store %arg7[%c56, %c0_24], %22 {strides = array<i32>} : memref<72x306xf32, #tpu.memory_space<vmem>>, vector<8x306xf32>,
    %c0_25 = arith.constant 0 : index
    %c0_26 = arith.constant 0 : index
    %c38 = arith.constant 38 : index
    %24 = vector.load %arg1[%c0_25, %c0_26, %c38] : memref<1x8x384xf32, #tpu.memory_space<vmem>>, vector<1x8x306xf32>
    %25 = vector.shape_cast %24 : vector<1x8x306xf32> to vector<8x306xf32>
    %c64 = arith.constant 64 : index
    %c0_27 = arith.constant 0 : index
    %26 = vector.load %arg7[%c64, %c0_27] : memref<72x306xf32, #tpu.memory_space<vmem>>, vector<8x306xf32>
    tpu.vector_store %arg7[%c64, %c0_27], %25 {strides = array<i32>} : memref<72x306xf32, #tpu.memory_space<vmem>>, vector<8x306xf32>,
    %c0_28 = arith.constant 0 : index
    %c0_29 = arith.constant 0 : index
    %27 = vector.load %arg3[%c0_28, %c0_29] : memref<32x72xf32, #tpu.memory_space<vmem>>, vector<32x72xf32>
    %c0_30 = arith.constant 0 : index
    %c0_31 = arith.constant 0 : index
    %28 = vector.load %arg7[%c0_30, %c0_31] : memref<72x306xf32, #tpu.memory_space<vmem>>, vector<72x306xf32>
    %cst = arith.constant dense<0.000000e+00> : vector<32x306xf32>
    %29 = tpu.matmul %27, %28, %cst {dimension_numbers = #tpu.dot_dimension_numbers<[1], [0], [0], [1], [0, 0, 1, 1], [], []>} : vector<32x72xf32>, vector<72x306xf32>, vector<32x306xf32> -> vector<32x306xf32>
    %c0_32 = arith.constant 0 : index
    %c0_33 = arith.constant 0 : index
    %c0_34 = arith.constant 0 : index
    %30 = vector.load %arg5[%c0_32, %c0_33, %c0_34] : memref<1x1x306xf32, #tpu.memory_space<vmem>>, vector<1x1x306xf32>
    %31 = vector.shape_cast %30 : vector<1x1x306xf32> to vector<1x306xf32>
    %32 = vector.broadcast %31 : vector<1x306xf32> to vector<32x306xf32>
    %33 = arith.mulf %29, %32 : vector<32x306xf32>
    %cst_35 = arith.constant dense<0.000000e+00> : vector<32xf32>
    %34 = vector.multi_reduction <add>, %33, %cst_35 [1] : vector<32x306xf32> to vector<32xf32>
    %35 = vector.shape_cast %34 : vector<32xf32> to vector<32x1xf32>
    %36 = arith.mulf %33, %33 : vector<32x306xf32>
    %cst_36 = arith.constant dense<0.000000e+00> : vector<32xf32>
    %37 = vector.multi_reduction <add>, %36, %cst_36 [1] : vector<32x306xf32> to vector<32xf32>
    %38 = vector.shape_cast %37 : vector<32xf32> to vector<32x1xf32>
    %39 = vector.extract_strided_slice %35 {offsets = [0, 0], sizes = [8, 1], strides = [1, 1]} : vector<32x1xf32> to vector<8x1xf32>
    %40 = vector.extract_strided_slice %35 {offsets = [8, 0], sizes = [8, 1], strides = [1, 1]} : vector<32x1xf32> to vector<8x1xf32>
    %41 = arith.addf %39, %40 : vector<8x1xf32>
    %42 = vector.extract_strided_slice %35 {offsets = [16, 0], sizes = [8, 1], strides = [1, 1]} : vector<32x1xf32> to vector<8x1xf32>
    %43 = arith.addf %41, %42 : vector<8x1xf32>
    %44 = vector.extract_strided_slice %35 {offsets = [24, 0], sizes = [8, 1], strides = [1, 1]} : vector<32x1xf32> to vector<8x1xf32>
    %45 = arith.addf %43, %44 : vector<8x1xf32>
    %46 = vector.extract_strided_slice %38 {offsets = [0, 0], sizes = [8, 1], strides = [1, 1]} : vector<32x1xf32> to vector<8x1xf32>
    %47 = vector.extract_strided_slice %38 {offsets = [8, 0], sizes = [8, 1], strides = [1, 1]} : vector<32x1xf32> to vector<8x1xf32>
    %48 = arith.addf %46, %47 : vector<8x1xf32>
    %49 = vector.extract_strided_slice %38 {offsets = [16, 0], sizes = [8, 1], strides = [1, 1]} : vector<32x1xf32> to vector<8x1xf32>
    %50 = arith.addf %48, %49 : vector<8x1xf32>
    %51 = vector.extract_strided_slice %38 {offsets = [24, 0], sizes = [8, 1], strides = [1, 1]} : vector<32x1xf32> to vector<8x1xf32>
    %52 = arith.addf %50, %51 : vector<8x1xf32>
    %cst_37 = arith.constant 9.765625E-4 : f32
    %53 = vector.broadcast %cst_37 : f32 to vector<8x1xf32>
    %54 = arith.mulf %45, %53 : vector<8x1xf32>
    %cst_38 = arith.constant 9.765625E-4 : f32
    %55 = vector.broadcast %cst_38 : f32 to vector<8x1xf32>
    %56 = arith.mulf %52, %55 : vector<8x1xf32>
    %57 = arith.mulf %54, %54 : vector<8x1xf32>
    %58 = arith.subf %56, %57 : vector<8x1xf32>
    %cst_39 = arith.constant 9.99999974E-6 : f32
    %59 = vector.broadcast %cst_39 : f32 to vector<8x1xf32>
    %60 = arith.addf %58, %59 : vector<8x1xf32>
    %61 = math.rsqrt %60 : vector<8x1xf32>
    %62 = tpu.concatenate %54, %54, %54, %54 in 0 : vector<8x1xf32>, vector<8x1xf32>, vector<8x1xf32>, vector<8x1xf32> -> vector<32x1xf32>
    %63 = tpu.concatenate %61, %61, %61, %61 in 0 : vector<8x1xf32>, vector<8x1xf32>, vector<8x1xf32>, vector<8x1xf32> -> vector<32x1xf32>
    %64 = vector.broadcast %62 : vector<32x1xf32> to vector<32x306xf32>
    %65 = arith.subf %33, %64 : vector<32x306xf32>
    %66 = vector.broadcast %63 : vector<32x1xf32> to vector<32x306xf32>
    %67 = arith.mulf %65, %66 : vector<32x306xf32>
    %cst_40 = arith.constant 0.000000e+00 : f32
    %68 = vector.broadcast %cst_40 : f32 to vector<32x306xf32>
    %69 = arith.maximumf %67, %68 : vector<32x306xf32>
    %70 = vector.broadcast %31 : vector<1x306xf32> to vector<32x306xf32>
    %71 = arith.mulf %69, %70 : vector<32x306xf32>
    %cst_41 = arith.constant 0.000000e+00 : f32
    %72 = vector.broadcast %cst_41 : f32 to vector<32x512xf32>
    %c0_42 = arith.constant 0 : index
    %c0_43 = arith.constant 0 : index
    %73 = vector.load %arg8[%c0_42, %c0_43] : memref<32x512xf32, #tpu.memory_space<vmem>>, vector<32x512xf32>
    tpu.vector_store %arg8[%c0_42, %c0_43], %72 {strides = array<i32>} : memref<32x512xf32, #tpu.memory_space<vmem>>, vector<32x512xf32>,
    %c0_44 = arith.constant 0 : index
    %c0_45 = arith.constant 0 : index
    %74 = vector.load %arg8[%c0_44, %c0_45] : memref<32x512xf32, #tpu.memory_space<vmem>>, vector<32x306xf32>
    tpu.vector_store %arg8[%c0_44, %c0_45], %71 {strides = array<i32>} : memref<32x512xf32, #tpu.memory_space<vmem>>, vector<32x306xf32>,
    %c0_46 = arith.constant 0 : index
    %c19_47 = arith.constant 19 : index
    %75 = vector.load %arg8[%c0_46, %c19_47] : memref<32x512xf32, #tpu.memory_space<vmem>>, vector<8x384xf32>
    %c0_48 = arith.constant 0 : index
    %c0_49 = arith.constant 0 : index
    %76 = vector.load %arg9[%c0_48, %c0_49] : memref<256x384xf32, #tpu.memory_space<vmem>>, vector<8x384xf32>
    tpu.vector_store %arg9[%c0_48, %c0_49], %75 {strides = array<i32>} : memref<256x384xf32, #tpu.memory_space<vmem>>, vector<8x384xf32>,
    %c0_50 = arith.constant 0 : index
    %c0_51 = arith.constant 0 : index
    %c19_52 = arith.constant 19 : index
    %77 = vector.load %arg2[%c0_50, %c0_51, %c19_52] : memref<1x32x512xf32, #tpu.memory_space<vmem>>, vector<1x8x384xf32>
    %78 = vector.shape_cast %77 : vector<1x8x384xf32> to vector<8x384xf32>
    %c8_53 = arith.constant 8 : index
    %c0_54 = arith.constant 0 : index
    %79 = vector.load %arg9[%c8_53, %c0_54] : memref<256x384xf32, #tpu.memory_space<vmem>>, vector<8x384xf32>
    tpu.vector_store %arg9[%c8_53, %c0_54], %78 {strides = array<i32>} : memref<256x384xf32, #tpu.memory_space<vmem>>, vector<8x384xf32>,
    %c0_55 = arith.constant 0 : index
    %c20_56 = arith.constant 20 : index
    %80 = vector.load %arg8[%c0_55, %c20_56] : memref<32x512xf32, #tpu.memory_space<vmem>>, vector<8x384xf32>
    %c16_57 = arith.constant 16 : index
    %c0_58 = arith.constant 0 : index
    %81 = vector.load %arg9[%c16_57, %c0_58] : memref<256x384xf32, #tpu.memory_space<vmem>>, vector<8x384xf32>
    tpu.vector_store %arg9[%c16_57, %c0_58], %80 {strides = array<i32>} : memref<256x384xf32, #tpu.memory_space<vmem>>, vector<8x384xf32>,
    %c0_59 = arith.constant 0 : index
    %c0_60 = arith.constant 0 : index
    %c20_61 = arith.constant 20 : index
    %82 = vector.load %arg2[%c0_59, %c0_60, %c20_61] : memref<1x32x512xf32, #tpu.memory_space<vmem>>, vector<1x8x384xf32>
    %83 = vector.shape_cast %82 : vector<1x8x384xf32> to vector<8x384xf32>
    %c24_62 = arith.constant 24 : index
    %c0_63 = arith.constant 0 : index
    %84 = vector.load %arg9[%c24_62, %c0_63] : memref<256x384xf32, #tpu.memory_space<vmem>>, vector<8x384xf32>
    tpu.vector_store %arg9[%c24_62, %c0_63], %83 {strides = array<i32>} : memref<256x384xf32, #tpu.memory_space<vmem>>, vector<8x384xf32>,
    %c0_64 = arith.constant 0 : index
    %c37_65 = arith.constant 37 : index
    %85 = vector.load %arg8[%c0_64, %c37_65] : memref<32x512xf32, #tpu.memory_space<vmem>>, vector<8x384xf32>
    %c32_66 = arith.constant 32 : index
    %c0_67 = arith.constant 0 : index
    %86 = vector.load %arg9[%c32_66, %c0_67] : memref<256x384xf32, #tpu.memory_space<vmem>>, vector<8x384xf32>
    tpu.vector_store %arg9[%c32_66, %c0_67], %85 {strides = array<i32>} : memref<256x384xf32, #tpu.memory_space<vmem>>, vector<8x384xf32>,
    %c0_68 = arith.constant 0 : index
    %c0_69 = arith.constant 0 : index
    %c37_70 = arith.constant 37 : index
    %87 = vector.load %arg2[%c0_68, %c0_69, %c37_70] : memref<1x32x512xf32, #tpu.memory_space<vmem>>, vector<1x8x384xf32>
    %88 = vector.shape_cast %87 : vector<1x8x384xf32> to vector<8x384xf32>
    %c40_71 = arith.constant 40 : index
    %c0_72 = arith.constant 0 : index
    %89 = vector.load %arg9[%c40_71, %c0_72] : memref<256x384xf32, #tpu.memory_space<vmem>>, vector<8x384xf32>
    tpu.vector_store %arg9[%c40_71, %c0_72], %88 {strides = array<i32>} : memref<256x384xf32, #tpu.memory_space<vmem>>, vector<8x384xf32>,
    %c0_73 = arith.constant 0 : index
    %c38_74 = arith.constant 38 : index
    %90 = vector.load %arg8[%c0_73, %c38_74] : memref<32x512xf32, #tpu.memory_space<vmem>>, vector<8x384xf32>
    %c48_75 = arith.constant 48 : index
    %c0_76 = arith.constant 0 : index
    %91 = vector.load %arg9[%c48_75, %c0_76] : memref<256x384xf32, #tpu.memory_space<vmem>>, vector<8x384xf32>
    tpu.vector_store %arg9[%c48_75, %c0_76], %90 {strides = array<i32>} : memref<256x384xf32, #tpu.memory_space<vmem>>, vector<8x384xf32>,
    %c0_77 = arith.constant 0 : index
    %c0_78 = arith.constant 0 : index
    %c38_79 = arith.constant 38 : index
    %92 = vector.load %arg2[%c0_77, %c0_78, %c38_79] : memref<1x32x512xf32, #tpu.memory_space<vmem>>, vector<1x8x384xf32>
    %93 = vector.shape_cast %92 : vector<1x8x384xf32> to vector<8x384xf32>
    %c56_80 = arith.constant 56 : index
    %c0_81 = arith.constant 0 : index
    %94 = vector.load %arg9[%c56_80, %c0_81] : memref<256x384xf32, #tpu.memory_space<vmem>>, vector<8x384xf32>
    tpu.vector_store %arg9[%c56_80, %c0_81], %93 {strides = array<i32>} : memref<256x384xf32, #tpu.memory_space<vmem>>, vector<8x384xf32>,
    %c8_82 = arith.constant 8 : index
    %c18_83 = arith.constant 18 : index
    %95 = vector.load %arg8[%c8_82, %c18_83] : memref<32x512xf32, #tpu.memory_space<vmem>>, vector<8x384xf32>
    %c64_84 = arith.constant 64 : index
    %c0_85 = arith.constant 0 : index
    %96 = vector.load %arg9[%c64_84, %c0_85] : memref<256x384xf32, #tpu.memory_space<vmem>>, vector<8x384xf32>
    tpu.vector_store %arg9[%c64_84, %c0_85], %95 {strides = array<i32>} : memref<256x384xf32, #tpu.memory_space<vmem>>, vector<8x384xf32>,
    %c0_86 = arith.constant 0 : index
    %c8_87 = arith.constant 8 : index
    %c18_88 = arith.constant 18 : index
    %97 = vector.load %arg2[%c0_86, %c8_87, %c18_88] : memref<1x32x512xf32, #tpu.memory_space<vmem>>, vector<1x8x384xf32>
    %98 = vector.shape_cast %97 : vector<1x8x384xf32> to vector<8x384xf32>
    %c72 = arith.constant 72 : index
    %c0_89 = arith.constant 0 : index
    %99 = vector.load %arg9[%c72, %c0_89] : memref<256x384xf32, #tpu.memory_space<vmem>>, vector<8x384xf32>
    tpu.vector_store %arg9[%c72, %c0_89], %98 {strides = array<i32>} : memref<256x384xf32, #tpu.memory_space<vmem>>, vector<8x384xf32>,
    %c8_90 = arith.constant 8 : index
    %c19_91 = arith.constant 19 : index
    %100 = vector.load %arg8[%c8_90, %c19_91] : memref<32x512xf32, #tpu.memory_space<vmem>>, vector<8x384xf32>
    %c80 = arith.constant 80 : index
    %c0_92 = arith.constant 0 : index
    %101 = vector.load %arg9[%c80, %c0_92] : memref<256x384xf32, #tpu.memory_space<vmem>>, vector<8x384xf32>
    tpu.vector_store %arg9[%c80, %c0_92], %100 {strides = array<i32>} : memref<256x384xf32, #tpu.memory_space<vmem>>, vector<8x384xf32>,
    %c0_93 = arith.constant 0 : index
    %c8_94 = arith.constant 8 : index
    %c19_95 = arith.constant 19 : index
    %102 = vector.load %arg2[%c0_93, %c8_94, %c19_95] : memref<1x32x512xf32, #tpu.memory_space<vmem>>, vector<1x8x384xf32>
    %103 = vector.shape_cast %102 : vector<1x8x384xf32> to vector<8x384xf32>
    %c88 = arith.constant 88 : index
    %c0_96 = arith.constant 0 : index
    %104 = vector.load %arg9[%c88, %c0_96] : memref<256x384xf32, #tpu.memory_space<vmem>>, vector<8x384xf32>
    tpu.vector_store %arg9[%c88, %c0_96], %103 {strides = array<i32>} : memref<256x384xf32, #tpu.memory_space<vmem>>, vector<8x384xf32>,
    %c8_97 = arith.constant 8 : index
    %c36_98 = arith.constant 36 : index
    %105 = vector.load %arg8[%c8_97, %c36_98] : memref<32x512xf32, #tpu.memory_space<vmem>>, vector<8x384xf32>
    %c96 = arith.constant 96 : index
    %c0_99 = arith.constant 0 : index
    %106 = vector.load %arg9[%c96, %c0_99] : memref<256x384xf32, #tpu.memory_space<vmem>>, vector<8x384xf32>
    tpu.vector_store %arg9[%c96, %c0_99], %105 {strides = array<i32>} : memref<256x384xf32, #tpu.memory_space<vmem>>, vector<8x384xf32>,
    %c0_100 = arith.constant 0 : index
    %c8_101 = arith.constant 8 : index
    %c36_102 = arith.constant 36 : index
    %107 = vector.load %arg2[%c0_100, %c8_101, %c36_102] : memref<1x32x512xf32, #tpu.memory_space<vmem>>, vector<1x8x384xf32>
    %108 = vector.shape_cast %107 : vector<1x8x384xf32> to vector<8x384xf32>
    %c104 = arith.constant 104 : index
    %c0_103 = arith.constant 0 : index
    %109 = vector.load %arg9[%c104, %c0_103] : memref<256x384xf32, #tpu.memory_space<vmem>>, vector<8x384xf32>
    tpu.vector_store %arg9[%c104, %c0_103], %108 {strides = array<i32>} : memref<256x384xf32, #tpu.memory_space<vmem>>, vector<8x384xf32>,
    %c8_104 = arith.constant 8 : index
    %c37_105 = arith.constant 37 : index
    %110 = vector.load %arg8[%c8_104, %c37_105] : memref<32x512xf32, #tpu.memory_space<vmem>>, vector<8x384xf32>
    %c112 = arith.constant 112 : index
    %c0_106 = arith.constant 0 : index
    %111 = vector.load %arg9[%c112, %c0_106] : memref<256x384xf32, #tpu.memory_space<vmem>>, vector<8x384xf32>
    tpu.vector_store %arg9[%c112, %c0_106], %110 {strides = array<i32>} : memref<256x384xf32, #tpu.memory_space<vmem>>, vector<8x384xf32>,
    %c0_107 = arith.constant 0 : index
    %c8_108 = arith.constant 8 : index
    %c37_109 = arith.constant 37 : index
    %112 = vector.load %arg2[%c0_107, %c8_108, %c37_109] : memref<1x32x512xf32, #tpu.memory_space<vmem>>, vector<1x8x384xf32>
    %113 = vector.shape_cast %112 : vector<1x8x384xf32> to vector<8x384xf32>
    %c120 = arith.constant 120 : index
    %c0_110 = arith.constant 0 : index
    %114 = vector.load %arg9[%c120, %c0_110] : memref<256x384xf32, #tpu.memory_space<vmem>>, vector<8x384xf32>
    tpu.vector_store %arg9[%c120, %c0_110], %113 {strides = array<i32>} : memref<256x384xf32, #tpu.memory_space<vmem>>, vector<8x384xf32>,
    %c16_111 = arith.constant 16 : index
    %c1_112 = arith.constant 1 : index
    %115 = vector.load %arg8[%c16_111, %c1_112] : memref<32x512xf32, #tpu.memory_space<vmem>>, vector<8x384xf32>
    %c128 = arith.constant 128 : index
    %c0_113 = arith.constant 0 : index
    %116 = vector.load %arg9[%c128, %c0_113] : memref<256x384xf32, #tpu.memory_space<vmem>>, vector<8x384xf32>
    tpu.vector_store %arg9[%c128, %c0_113], %115 {strides = array<i32>} : memref<256x384xf32, #tpu.memory_space<vmem>>, vector<8x384xf32>,
    %c0_114 = arith.constant 0 : index
    %c16_115 = arith.constant 16 : index
    %c1_116 = arith.constant 1 : index
    %117 = vector.load %arg2[%c0_114, %c16_115, %c1_116] : memref<1x32x512xf32, #tpu.memory_space<vmem>>, vector<1x8x384xf32>
    %118 = vector.shape_cast %117 : vector<1x8x384xf32> to vector<8x384xf32>
    %c136 = arith.constant 136 : index
    %c0_117 = arith.constant 0 : index
    %119 = vector.load %arg9[%c136, %c0_117] : memref<256x384xf32, #tpu.memory_space<vmem>>, vector<8x384xf32>
    tpu.vector_store %arg9[%c136, %c0_117], %118 {strides = array<i32>} : memref<256x384xf32, #tpu.memory_space<vmem>>, vector<8x384xf32>,
    %c16_118 = arith.constant 16 : index
    %c2_119 = arith.constant 2 : index
    %120 = vector.load %arg8[%c16_118, %c2_119] : memref<32x512xf32, #tpu.memory_space<vmem>>, vector<8x384xf32>
    %c144 = arith.constant 144 : index
    %c0_120 = arith.constant 0 : index
    %121 = vector.load %arg9[%c144, %c0_120] : memref<256x384xf32, #tpu.memory_space<vmem>>, vector<8x384xf32>
    tpu.vector_store %arg9[%c144, %c0_120], %120 {strides = array<i32>} : memref<256x384xf32, #tpu.memory_space<vmem>>, vector<8x384xf32>,
    %c0_121 = arith.constant 0 : index
    %c16_122 = arith.constant 16 : index
    %c2_123 = arith.constant 2 : index
    %122 = vector.load %arg2[%c0_121, %c16_122, %c2_123] : memref<1x32x512xf32, #tpu.memory_space<vmem>>, vector<1x8x384xf32>
    %123 = vector.shape_cast %122 : vector<1x8x384xf32> to vector<8x384xf32>
    %c152 = arith.constant 152 : index
    %c0_124 = arith.constant 0 : index
    %124 = vector.load %arg9[%c152, %c0_124] : memref<256x384xf32, #tpu.memory_space<vmem>>, vector<8x384xf32>
    tpu.vector_store %arg9[%c152, %c0_124], %123 {strides = array<i32>} : memref<256x384xf32, #tpu.memory_space<vmem>>, vector<8x384xf32>,
    %c16_125 = arith.constant 16 : index
    %c19_126 = arith.constant 19 : index
    %125 = vector.load %arg8[%c16_125, %c19_126] : memref<32x512xf32, #tpu.memory_space<vmem>>, vector<8x384xf32>
    %c160 = arith.constant 160 : index
    %c0_127 = arith.constant 0 : index
    %126 = vector.load %arg9[%c160, %c0_127] : memref<256x384xf32, #tpu.memory_space<vmem>>, vector<8x384xf32>
    tpu.vector_store %arg9[%c160, %c0_127], %125 {strides = array<i32>} : memref<256x384xf32, #tpu.memory_space<vmem>>, vector<8x384xf32>,
    %c0_128 = arith.constant 0 : index
    %c16_129 = arith.constant 16 : index
    %c19_130 = arith.constant 19 : index
    %127 = vector.load %arg2[%c0_128, %c16_129, %c19_130] : memref<1x32x512xf32, #tpu.memory_space<vmem>>, vector<1x8x384xf32>
    %128 = vector.shape_cast %127 : vector<1x8x384xf32> to vector<8x384xf32>
    %c168 = arith.constant 168 : index
    %c0_131 = arith.constant 0 : index
    %129 = vector.load %arg9[%c168, %c0_131] : memref<256x384xf32, #tpu.memory_space<vmem>>, vector<8x384xf32>
    tpu.vector_store %arg9[%c168, %c0_131], %128 {strides = array<i32>} : memref<256x384xf32, #tpu.memory_space<vmem>>, vector<8x384xf32>,
    %c16_132 = arith.constant 16 : index
    %c20_133 = arith.constant 20 : index
    %130 = vector.load %arg8[%c16_132, %c20_133] : memref<32x512xf32, #tpu.memory_space<vmem>>, vector<8x384xf32>
    %c176 = arith.constant 176 : index
    %c0_134 = arith.constant 0 : index
    %131 = vector.load %arg9[%c176, %c0_134] : memref<256x384xf32, #tpu.memory_space<vmem>>, vector<8x384xf32>
    tpu.vector_store %arg9[%c176, %c0_134], %130 {strides = array<i32>} : memref<256x384xf32, #tpu.memory_space<vmem>>, vector<8x384xf32>,
    %c0_135 = arith.constant 0 : index
    %c16_136 = arith.constant 16 : index
    %c20_137 = arith.constant 20 : index
    %132 = vector.load %arg2[%c0_135, %c16_136, %c20_137] : memref<1x32x512xf32, #tpu.memory_space<vmem>>, vector<1x8x384xf32>
    %133 = vector.shape_cast %132 : vector<1x8x384xf32> to vector<8x384xf32>
    %c184 = arith.constant 184 : index
    %c0_138 = arith.constant 0 : index
    %134 = vector.load %arg9[%c184, %c0_138] : memref<256x384xf32, #tpu.memory_space<vmem>>, vector<8x384xf32>
    tpu.vector_store %arg9[%c184, %c0_138], %133 {strides = array<i32>} : memref<256x384xf32, #tpu.memory_space<vmem>>, vector<8x384xf32>,
    %c24_139 = arith.constant 24 : index
    %c0_140 = arith.constant 0 : index
    %135 = vector.load %arg8[%c24_139, %c0_140] : memref<32x512xf32, #tpu.memory_space<vmem>>, vector<8x384xf32>
    %c192 = arith.constant 192 : index
    %c0_141 = arith.constant 0 : index
    %136 = vector.load %arg9[%c192, %c0_141] : memref<256x384xf32, #tpu.memory_space<vmem>>, vector<8x384xf32>
    tpu.vector_store %arg9[%c192, %c0_141], %135 {strides = array<i32>} : memref<256x384xf32, #tpu.memory_space<vmem>>, vector<8x384xf32>,
    %c0_142 = arith.constant 0 : index
    %c24_143 = arith.constant 24 : index
    %c0_144 = arith.constant 0 : index
    %137 = vector.load %arg2[%c0_142, %c24_143, %c0_144] : memref<1x32x512xf32, #tpu.memory_space<vmem>>, vector<1x8x384xf32>
    %138 = vector.shape_cast %137 : vector<1x8x384xf32> to vector<8x384xf32>
    %c200 = arith.constant 200 : index
    %c0_145 = arith.constant 0 : index
    %139 = vector.load %arg9[%c200, %c0_145] : memref<256x384xf32, #tpu.memory_space<vmem>>, vector<8x384xf32>
    tpu.vector_store %arg9[%c200, %c0_145], %138 {strides = array<i32>} : memref<256x384xf32, #tpu.memory_space<vmem>>, vector<8x384xf32>,
    %c24_146 = arith.constant 24 : index
    %c1_147 = arith.constant 1 : index
    %140 = vector.load %arg8[%c24_146, %c1_147] : memref<32x512xf32, #tpu.memory_space<vmem>>, vector<8x384xf32>
    %c208 = arith.constant 208 : index
    %c0_148 = arith.constant 0 : index
    %141 = vector.load %arg9[%c208, %c0_148] : memref<256x384xf32, #tpu.memory_space<vmem>>, vector<8x384xf32>
    tpu.vector_store %arg9[%c208, %c0_148], %140 {strides = array<i32>} : memref<256x384xf32, #tpu.memory_space<vmem>>, vector<8x384xf32>,
    %c0_149 = arith.constant 0 : index
    %c24_150 = arith.constant 24 : index
    %c1_151 = arith.constant 1 : index
    %142 = vector.load %arg2[%c0_149, %c24_150, %c1_151] : memref<1x32x512xf32, #tpu.memory_space<vmem>>, vector<1x8x384xf32>
    %143 = vector.shape_cast %142 : vector<1x8x384xf32> to vector<8x384xf32>
    %c216 = arith.constant 216 : index
    %c0_152 = arith.constant 0 : index
    %144 = vector.load %arg9[%c216, %c0_152] : memref<256x384xf32, #tpu.memory_space<vmem>>, vector<8x384xf32>
    tpu.vector_store %arg9[%c216, %c0_152], %143 {strides = array<i32>} : memref<256x384xf32, #tpu.memory_space<vmem>>, vector<8x384xf32>,
    %c24_153 = arith.constant 24 : index
    %c18_154 = arith.constant 18 : index
    %145 = vector.load %arg8[%c24_153, %c18_154] : memref<32x512xf32, #tpu.memory_space<vmem>>, vector<8x384xf32>
    %c224 = arith.constant 224 : index
    %c0_155 = arith.constant 0 : index
    %146 = vector.load %arg9[%c224, %c0_155] : memref<256x384xf32, #tpu.memory_space<vmem>>, vector<8x384xf32>
    tpu.vector_store %arg9[%c224, %c0_155], %145 {strides = array<i32>} : memref<256x384xf32, #tpu.memory_space<vmem>>, vector<8x384xf32>,
    %c0_156 = arith.constant 0 : index
    %c24_157 = arith.constant 24 : index
    %c18_158 = arith.constant 18 : index
    %147 = vector.load %arg2[%c0_156, %c24_157, %c18_158] : memref<1x32x512xf32, #tpu.memory_space<vmem>>, vector<1x8x384xf32>
    %148 = vector.shape_cast %147 : vector<1x8x384xf32> to vector<8x384xf32>
    %c232 = arith.constant 232 : index
    %c0_159 = arith.constant 0 : index
    %149 = vector.load %arg9[%c232, %c0_159] : memref<256x384xf32, #tpu.memory_space<vmem>>, vector<8x384xf32>
    tpu.vector_store %arg9[%c232, %c0_159], %148 {strides = array<i32>} : memref<256x384xf32, #tpu.memory_space<vmem>>, vector<8x384xf32>,
    %c24_160 = arith.constant 24 : index
    %c19_161 = arith.constant 19 : index
    %150 = vector.load %arg8[%c24_160, %c19_161] : memref<32x512xf32, #tpu.memory_space<vmem>>, vector<8x384xf32>
    %c240 = arith.constant 240 : index
    %c0_162 = arith.constant 0 : index
    %151 = vector.load %arg9[%c240, %c0_162] : memref<256x384xf32, #tpu.memory_space<vmem>>, vector<8x384xf32>
    tpu.vector_store %arg9[%c240, %c0_162], %150 {strides = array<i32>} : memref<256x384xf32, #tpu.memory_space<vmem>>, vector<8x384xf32>,
    %c0_163 = arith.constant 0 : index
    %c24_164 = arith.constant 24 : index
    %c19_165 = arith.constant 19 : index
    %152 = vector.load %arg2[%c0_163, %c24_164, %c19_165] : memref<1x32x512xf32, #tpu.memory_space<vmem>>, vector<1x8x384xf32>
    %153 = vector.shape_cast %152 : vector<1x8x384xf32> to vector<8x384xf32>
    %c248 = arith.constant 248 : index
    %c0_166 = arith.constant 0 : index
    %154 = vector.load %arg9[%c248, %c0_166] : memref<256x384xf32, #tpu.memory_space<vmem>>, vector<8x384xf32>
    tpu.vector_store %arg9[%c248, %c0_166], %153 {strides = array<i32>} : memref<256x384xf32, #tpu.memory_space<vmem>>, vector<8x384xf32>,
    %c0_167 = arith.constant 0 : index
    %c0_168 = arith.constant 0 : index
    %155 = vector.load %arg4[%c0_167, %c0_168] : memref<32x256xf32, #tpu.memory_space<vmem>>, vector<32x256xf32>
    %c0_169 = arith.constant 0 : index
    %c0_170 = arith.constant 0 : index
    %156 = vector.load %arg9[%c0_169, %c0_170] : memref<256x384xf32, #tpu.memory_space<vmem>>, vector<256x384xf32>
    %cst_171 = arith.constant dense<0.000000e+00> : vector<32x384xf32>
    %157 = tpu.matmul %155, %156, %cst_171 {dimension_numbers = #tpu.dot_dimension_numbers<[1], [0], [0], [1], [0, 0, 1, 1], [], []>} : vector<32x256xf32>, vector<256x384xf32>, vector<32x384xf32> -> vector<32x384xf32>
    %c0_172 = arith.constant 0 : index
    %c0_173 = arith.constant 0 : index
    %c0_174 = arith.constant 0 : index
    %158 = vector.load %arg6[%c0_172, %c0_173, %c0_174] : memref<1x32x384xf32, #tpu.memory_space<vmem>>, vector<1x32x384xf32>
    %159 = vector.shape_cast %158 : vector<1x32x384xf32> to vector<32x384xf32>
    %160 = vector.shape_cast %157 : vector<32x384xf32> to vector<1x32x384xf32>
    tpu.vector_store %arg6[%c0_172, %c0_173, %c0_174], %160 {strides = array<i32>} : memref<1x32x384xf32, #tpu.memory_space<vmem>>, vector<1x32x384xf32>,
    return
  }
  func.func @transform_0(%arg0: i32) -> (i32, i32, i32) {
    %c0_i32 = arith.constant 0 : i32
    %c0_i32_0 = arith.constant 0 : i32
    %c0_i32_1 = arith.constant 0 : i32
    return %arg0, %c0_i32, %c0_i32_0 : i32, i32, i32
  }
  func.func @transform_1(%arg0: i32) -> (i32, i32, i32) {
    %c0_i32 = arith.constant 0 : i32
    %c0_i32_0 = arith.constant 0 : i32
    %c0_i32_1 = arith.constant 0 : i32
    return %arg0, %c0_i32, %c0_i32_0 : i32, i32, i32
  }
  func.func @transform_2(%arg0: i32) -> (i32, i32) {
    %c0_i32 = arith.constant 0 : i32
    %c0_i32_0 = arith.constant 0 : i32
    %c0_i32_1 = arith.constant 0 : i32
    return %c0_i32, %c0_i32_0 : i32, i32
  }
  func.func @transform_3(%arg0: i32) -> (i32, i32) {
    %c0_i32 = arith.constant 0 : i32
    %c0_i32_0 = arith.constant 0 : i32
    %c0_i32_1 = arith.constant 0 : i32
    return %c0_i32, %c0_i32_0 : i32, i32
  }
  func.func @transform_4(%arg0: i32) -> (i32, i32, i32) {
    %c0_i32 = arith.constant 0 : i32
    %c0_i32_0 = arith.constant 0 : i32
    %c0_i32_1 = arith.constant 0 : i32
    %c0_i32_2 = arith.constant 0 : i32
    return %c0_i32, %c0_i32_0, %c0_i32_1 : i32, i32, i32
  }
  func.func @transform_5(%arg0: i32) -> (i32, i32, i32) {
    %c0_i32 = arith.constant 0 : i32
    %c0_i32_0 = arith.constant 0 : i32
    %c0_i32_1 = arith.constant 0 : i32
    return %arg0, %c0_i32, %c0_i32_0 : i32, i32, i32
  }
}

</mosaic_0001>

<bundles_post_ra>
// kernel: uu2d_forward.1
= control target key start
LH: loop header
LB: loop body
LE: loop exit
PB: predicated region body
PF: predicated region fallthrough
CT: control target
= control target key end

     0   :  { %s2537_s18 = smov 0   ;;  %s3232_s0 = inlined_call_operand.vmem [shape: f32[2,8,384], index: 0, kind: input, shape index: {}]   ;;  %s3233_s1 = inlined_call_operand.vmem [shape: f32[2,32,512], index: 1, kind: input, shape index: {}]   ;;  %s3234_s2 = inlined_call_operand.vmem [shape: f32[32,72], index: 2, kind: input, shape index: {}]   ;;  %s3235_s3 = inlined_call_operand.vmem [shape: f32[32,256], index: 3, kind: input, shape index: {}]   ;;  %s3236_s4 = inlined_call_operand.vmem [shape: f32[1,1,306], index: 4, kind: input, shape index: {}]   ;;  %s3237_s5 = inlined_call_operand.vmem [shape: f32[2,32,384], index: 5, kind: output, shape index: {}]  }
   0x1 LB: > { %s1936_s19 = sadd.s32 4294967295, %s2495_s18   ;;  %p1940_p0 = scmp.ge.s32.totalorder %s2495_s18, 1  ;;  %s2495_s18 = sphi %s2537_s18, %s15_s18  }
   0x2   : > { %p197_p1 = scmp.lt.s32.totalorder %s2495_s18, 3 }
   0x4   : > { %p198_p2 = pnand %p1940_p0, %p197_p1 }
   0x5   : > { %p230_p3 = scmp.lt.s32.totalorder (!%p198_p2), %s1936_s19, 1  ;;  %vm250_vm0 = vcmask (!%p198_p2), 408576   ;;  %s2497_s24 = smov (!%p198_p2), 127   ;;  %v2504_v3 = vmov (!%p198_p2), 0.0   ;;  %vm264_vm1 = vcmask (!%p198_p2), 1039360   ;;  %vm285_vm2 = vcmask (!%p198_p2), 1031168  }
   0x6   : > { %201 = sbr.rel (%p198_p2) target bundleno = 1171 (0x493), region = 40  ;;  %s2498_s25 = smov (!%p198_p2), 126   ;;  %528 = vmatprep.mubr.f32.mxu1 (!%p198_p2), %v2504_v3  ;;  %791 = vst [vmem:[#allocation3 + $0x10] sm:$0xff] (!%p198_p2), %v2504_v3  ;;  %795 = vst [vmem:[#allocation3 + $0x30] sm:$0xff] (!%p198_p2), %v2504_v3  ;;  %vm306_vm3 = vcmask (!%p198_p2), 900096   ;;  %vm327_vm4 = vcmask (!%p198_p2), 891904  }
   0x7   : > { %s2499_s26 = smov (!%p198_p2), 110   ;;  %s2500_s27 = smov (!%p198_p2), 109   ;;  %799 = vst [vmem:[#allocation3 + $0x50] sm:$0xff] (!%p198_p2), %v2504_v3  ;;  %803 = vst [vmem:[#allocation3 + $0x70] sm:$0xff] (!%p198_p2), %v2504_v3  ;;  %vm348_vm5 = vcmask (!%p198_p2), 883712   ;;  %vm369_vm6 = vcmask (!%p198_p2), 752640  }
   0x8   : > { %s2501_s28 = smov (!%p198_p2), 108   ;;  %s2502_s29 = smov (!%p198_p2), 92   ;;  %vm390_vm7 = vcmask (!%p198_p2), 744448   ;;  %vm411_vm8 = vcmask (!%p198_p2), 736256   ;;  %v420_v54 = vld [vmem:[%s3234_s2] sm:$0xff] (!%p198_p2)  ;;  %vm451_vm9 = vcmask (!%p198_p2), 588800  }
   0x9   : > { %s2503_s30 = smov (!%p198_p2), 91   ;;  %s2505_s6 = smov (!%p198_p2), 90   ;;  %v421_v59 = vld [vmem:[%s3234_s2 + $0x8] sm:$0xff] (!%p198_p2)  ;;  %v422_v63 = vld [vmem:[%s3234_s2 + $0x10] sm:$0xff] (!%p198_p2) }
   0xd   : > { %s3252_s19 = smov (!%p230_p3, %s1936_s19), 1 }
   0xe   : > { %s2165_s20 = smul.u32 24, %s3252_s19  ;;  %s1955_s17 = sshll.u32 %s3252_s19, 7 }
   0xf   : > { %s2721_s22 = scalar_lea.vmem %s3233_s1, %s1955_s17  ;;  %s2166_s14 = smul.u32 96, %s3252_s19 }
  0x10   : > { %s234_s23 = scalar_lea.vmem %s3232_s0, %s2165_s20 }
  0x11   : > { %v253_v0 = vld [vmem:[%s234_s23 + $0x8] sm:$0xff]  ;;  %v252_v1 = vld [vmem:[%s234_s23] sm:$0xff]  ;;  %v254_v2 = vld [vmem:[%s234_s23 + $0x10] sm:$0xff]  ;;  %s3215_s17 = scalar_lea.vmem %s3237_s5, %s2166_s14 }
  0x12   : > { %260 = vrot.lane.b32.xlu0 %v253_v0, %s2497_s24  ;;  %258 = vrot.lane.b32.xlu1 %v252_v1, %s2497_s24  ;;  %251 = vst.msk [vmem:[#allocation2 + $0x10] sm:$0xff] %vm250_vm0, %v254_v2 }
  0x16   : > { %262 = vrot.lane.b32.xlu0 %v254_v2, %s2497_s24  ;;  %281 = vrot.lane.b32.xlu1 %v253_v0, %s2498_s25 }
  0x19   : > { %v426_v50 = vld [vmem:[#allocation2 + $0x10] sm:$0xff] }
  0x1a   : > { %283 = vrot.lane.b32.xlu0 %v254_v2, %s2498_s25  ;;  %302 = vrot.lane.b32.xlu1 %v253_v0, %s2499_s26 }
  0x1e   : > { %304 = vrot.lane.b32.xlu0 %v254_v2, %s2499_s26  ;;  %279 = vrot.lane.b32.xlu1 %v252_v1, %s2498_s25 }
  0x22   : > { %300 = vrot.lane.b32.xlu0 %v252_v1, %s2499_s26  ;;  %323 = vrot.lane.b32.xlu1 %v253_v0, %s2500_s27 }
  0x26   : > { %325 = vrot.lane.b32.xlu0 %v254_v2, %s2500_s27  ;;  %344 = vrot.lane.b32.xlu1 %v253_v0, %s2501_s28 }
  0x2a   : > { %346 = vrot.lane.b32.xlu0 %v254_v2, %s2501_s28  ;;  %321 = vrot.lane.b32.xlu1 %v252_v1, %s2500_s27 }
  0x2e   : > { %342 = vrot.lane.b32.xlu0 %v252_v1, %s2501_s28  ;;  %365 = vrot.lane.b32.xlu1 %v253_v0, %s2502_s29 }
  0x32   : > { %367 = vrot.lane.b32.xlu0 %v254_v2, %s2502_s29  ;;  %386 = vrot.lane.b32.xlu1 %v253_v0, %s2503_s30 }
  0x36   : > { %388 = vrot.lane.b32.xlu0 %v254_v2, %s2503_s30  ;;  %363 = vrot.lane.b32.xlu1 %v252_v1, %s2502_s29 }
  0x3a   : > { %384 = vrot.lane.b32.xlu0 %v252_v1, %s2503_s30  ;;  %407 = vrot.lane.b32.xlu1 %v253_v0, %s2505_s6 }
  0x3e   : > { %409 = vrot.lane.b32.xlu0 %v254_v2, %s2505_s6  ;;  %405 = vrot.lane.b32.xlu1 %v252_v1, %s2505_s6 }
  0x84   : > { %v261_v4 = vpop.permute.xlu0 %260  ;;  %v259_v5 = vpop.permute.xlu1 %258 }
  0x85   : > { %v265_v6 = vsel %vm264_vm1, %v259_v5, %v261_v4 }
  0x86   : > { %v2039_v11 = vpack.c.bf16 %v265_v6, %v252_v1  ;;  %v640_v6 = vlaneseq }
  0x88   : > { %v263_v7 = vpop.permute.xlu0 %262  ;;  %v282_v8 = vpop.permute.xlu1 %281 }
  0x89   : > { %v266_v9 = vsel %vm264_vm1, %v261_v4, %v263_v7  ;;  %272 = vst.msk [vmem:[#allocation2 + $0x28] sm:$0xff] %vm250_vm0, %v263_v7  ;;  %v423_v4 = vld [vmem:[%s3234_s2 + $0x18] sm:$0xff] }
  0x8a   : > { %v2037_v10 = vpack.c.bf16 %v266_v9, %v253_v0  ;;  %v641_v9 = vshrl.u32 %v640_v6, 7 }
  0x8c   : > { %v284_v12 = vpop.permute.xlu0 %283  ;;  %v303_v13 = vpop.permute.xlu1 %302  ;;  %2038 = vmatprep.subr.bf16.mxu1 %v2037_v10 }
  0x8d   : > { %v287_v14 = vsel %vm285_vm2, %v282_v8, %v284_v12  ;;  %293 = vst.msk [vmem:[#allocation2 + $0x40] sm:$0xff] %vm250_vm0, %v284_v12  ;;  %2040 = vmatpush1.bf16.msra.mxu1 %v2039_v11  ;;  %v642_v12 = vsub.s32 0, %v641_v9 }
  0x90   : > { %v305_v15 = vpop.permute.xlu0 %304  ;;  %v280_v16 = vpop.permute.xlu1 %279  ;;  %v429_v51 = vld [vmem:[#allocation2 + $0x28] sm:$0xff] }
  0x91   : > { %v308_v17 = vsel %vm306_vm3, %v303_v13, %v305_v15  ;;  %314 = vst.msk [vmem:[#allocation2 + $0x58] sm:$0xff] %vm250_vm0, %v305_v15  ;;  %v286_v18 = vsel %vm285_vm2, %v280_v16, %v282_v8  ;;  %v2053_v56 = vpack.c.bf16 %v429_v51, %v426_v50  ;;  %v646_v15 = vsub.s32 1, %v641_v9 }
  0x92   : > { %v2041_v19 = vpack.c.bf16 %v308_v17, %v287_v14 }
  0x94   : > { %v301_v20 = vpop.permute.xlu0 %300  ;;  %v324_v21 = vpop.permute.xlu1 %323  ;;  %2042 = vmatprep.subr.bf16.mxu1 %v2041_v19  ;;  %v432_v57 = vld [vmem:[#allocation2 + $0x40] sm:$0xff] }
  0x95   : > { %v307_v22 = vsel %vm306_vm3, %v301_v20, %v303_v13  ;;  %v638_v13 = vld [vmem:[%s3236_s4] sm:$0x7] }
  0x96   : > { %v2043_v23 = vpack.c.bf16 %v307_v22, %v286_v18  ;;  %v2631_v17 = vrot.slane %v638_v13, %v642_v12  ;;  %v650_v18 = vsub.s32 2, %v641_v9  ;;  %v2633_v20 = vrot.slane %v638_v13, %v646_v15 }
  0x97   : > { %v2506_v12 = vmov 0  }
  0x98   : > { %v326_v24 = vpop.permute.xlu0 %325  ;;  %v345_v25 = vpop.permute.xlu1 %344  ;;  %2044 = vmatpush1.bf16.msra.mxu1 %v2043_v23  ;;  %v435_v55 = vld [vmem:[#allocation2 + $0x58] sm:$0xff]  ;;  %v2638_v23 = vrot.slane %v638_v13, %v650_v18  ;;  %2185 = vset.pattern.permute.xlu1 %v2506_v12 }
  0x99   : > { %v329_v26 = vsel %vm327_vm4, %v324_v21, %v326_v24  ;;  %335 = vst.msk [vmem:[#allocation2 + $0x70] sm:$0xff] %vm250_vm0, %v326_v24  ;;  %v2057_v58 = vpack.c.bf16 %v435_v55, %v432_v57  ;;  %2186 = vset.pattern.permute.xlu0 %v2506_v12 }
  0x9c   : > { %v347_v27 = vpop.permute.xlu0 %346  ;;  %v322_v28 = vpop.permute.xlu1 %321 }
  0x9d   : > { %v350_v29 = vsel %vm348_vm5, %v345_v25, %v347_v27  ;;  %356 = vst.msk [vmem:[#allocation2 + $0x88] sm:$0xff] %vm250_vm0, %v347_v27  ;;  %v328_v30 = vsel %vm327_vm4, %v322_v28, %v324_v21 }
  0x9e   : > { %v2045_v31 = vpack.c.bf16 %v350_v29, %v329_v26 }
  0xa0   : > { %v343_v32 = vpop.permute.xlu0 %342  ;;  %v366_v33 = vpop.permute.xlu1 %365  ;;  %2046 = vmatprep.subr.bf16.mxu1 %v2045_v31  ;;  %v438_v61 = vld [vmem:[#allocation2 + $0x70] sm:$0xff] }
  0xa1   : > { %v349_v34 = vsel %vm348_vm5, %v343_v32, %v345_v25 }
  0xa2   : > { %v2047_v35 = vpack.c.bf16 %v349_v34, %v328_v30 }
  0xa4   : > { %v368_v36 = vpop.permute.xlu0 %367  ;;  %v387_v37 = vpop.permute.xlu1 %386  ;;  %2048 = vmatpush1.bf16.msra.mxu1 %v2047_v35  ;;  %v441_v60 = vld [vmem:[#allocation2 + $0x88] sm:$0xff] }
  0xa5   : > { %v371_v38 = vsel %vm369_vm6, %v366_v33, %v368_v36  ;;  %377 = vst.msk [vmem:[#allocation2 + $0xa0] sm:$0xff] %vm250_vm0, %v368_v36  ;;  %v2061_v62 = vpack.c.bf16 %v441_v60, %v438_v61 }
  0xa8   : > { %v389_v39 = vpop.permute.xlu0 %388  ;;  %v364_v40 = vpop.permute.xlu1 %363 }
  0xa9   : > { %v392_v41 = vsel %vm390_vm7, %v387_v37, %v389_v39  ;;  %398 = vst.msk [vmem:[#allocation2 + $0xb8] sm:$0xff] %vm250_vm0, %v389_v39  ;;  %v370_v42 = vsel %vm369_vm6, %v364_v40, %v366_v33 }
  0xaa   : > { %v2049_v43 = vpack.c.bf16 %v392_v41, %v371_v38 }
  0xac   : > { %v385_v44 = vpop.permute.xlu0 %384  ;;  %v408_v45 = vpop.permute.xlu1 %407  ;;  %2050 = vmatprep.subr.bf16.mxu1 %v2049_v43  ;;  %v444_v1 = vld [vmem:[#allocation2 + $0xa0] sm:$0xff] }
  0xad   : > { %v391_v46 = vsel %vm390_vm7, %v385_v44, %v387_v37 }
  0xae   : > { %v2051_v47 = vpack.c.bf16 %v391_v46, %v370_v42 }
  0xb0   : > { %v410_v48 = vpop.permute.xlu0 %409  ;;  %v406_v49 = vpop.permute.xlu1 %405  ;;  %2052 = vmatpush1.bf16.msra.mxu1 %v2051_v47  ;;  %v447_v0 = vld [vmem:[#allocation2 + $0xb8] sm:$0xff] }
  0xb1   : > { %v413_v52 = vsel %vm411_vm8, %v408_v45, %v410_v48  ;;  %419 = vst.msk [vmem:[#allocation2 + $0xd0] sm:$0xff] %vm250_vm0, %v410_v48  ;;  %v412_v53 = vsel %vm411_vm8, %v406_v49, %v408_v45  ;;  %v2065_v2 = vpack.c.bf16 %v447_v0, %v444_v1 }
  0xb2   : > { %480 = vmatprep.subr.mxu1 %v413_v52 }
  0xb4   : > { %481 = vmatpush1.msra.mxu1 %v412_v53 }
  0xb5   : > { %1945 = vmatmul.mubr.msk.f32.vlgmr.msra.gmra.mrb[0].mxu1 %vm451_vm9, %v420_v54  ;;  %2054 = vmatprep.subr.bf16.mxu1 %v2053_v56 }
  0xb6   : > { %2056 = vmatpush3.bf16.msra.mxu1 %v2053_v56  ;;  %534 = vmatprep.mubr.f32.mxu1 %v2504_v3 }
  0xb7   : > { %2058 = vmatprep.subr.bf16.mxu1 %v2057_v58 }
  0xb8   : > { %v450_v5 = vld [vmem:[#allocation2 + $0xd0] sm:$0xff] }
  0xb9   : > { %1946 = vmatmul.mubr.msk.f32.gmra.mrb[2].mxu1 %vm451_vm9, %v421_v59 }
  0xba   : > { %2060 = vmatpush3.bf16.msra.mxu1 %v2057_v58  ;;  %540 = vmatprep.mubr.f32.mxu1 %v2504_v3 }
  0xbb   : > { %2062 = vmatprep.subr.bf16.mxu1 %v2061_v62 }
  0xbd   : > { %1947 = vmatmul.mubr.msk.f32.gmra.mrb[4].mxu1 %vm451_vm9, %v422_v63 }
  0xbe   : > { %2064 = vmatpush3.bf16.msra.mxu1 %v2061_v62  ;;  %546 = vmatprep.mubr.f32.mxu1 %v2504_v3 }
  0xbf   : > { %2066 = vmatprep.subr.bf16.mxu1 %v2065_v2 }
  0xc1   : > { %1948 = vmatmul.mubr.msk.f32.gmra.mrb[6].mxu1 %vm451_vm9, %v423_v4 }
  0xc2   : > { %2068 = vmatpush3.bf16.msra.mxu1 %v2065_v2  ;;  %2031 = vmatprep.mubr.msk.f32.mxu1 %vm451_vm9, %v420_v54 }
  0xc3   : > { %2029 = vmatprep.subr.mxu1 %v450_v5 }
  0xc6   : > { %2030 = vmatpush3.msra.mxu1 %v450_v5 }
  0xc7   : > { %2032 = vmatmul.mubr.msk.f32.vlgmr.msra.gmra.mrb[8].mxu1 %vm451_vm9, %v421_v59 }
  0xc8   : > { %2034 = vmatprep.mubr.msk.f32.mxu1 %vm451_vm9, %v422_v63 }
  0xcb   : > { %2035 = vmatmul.mubr.msk.f32.gmra.mrb[10].mxu1 %vm451_vm9, %v423_v4 }
 0x188   : > { %v530_v7 = vpop.f32.mrb[0].mxu1 }
 0x189   : > { %v532_v8 = vpop.f32.mrb[1].mxu1  ;;  %v2636_v22 = vmul.f32 %v2631_v17, %v530_v7 }
 0x18a   : > { %v2647_v26 = vmul.f32 %v2633_v20, %v532_v8 }
 0x18b   : > { %v687_v28 = vmul.f32 %v2636_v22, %v2636_v22 }
 0x18c   : > { %v536_v10 = vpop.f32.mrb[2].mxu1  ;;  %v688_v37 = vmul.f32 %v2647_v26, %v2647_v26  ;;  %v667_v39 = vadd.f32 %v2647_v26, %v2636_v22 }
 0x18d   : > { %v538_v11 = vpop.f32.mrb[3].mxu1  ;;  %v2641_v24 = vmul.f32 %v2631_v17, %v536_v10 }
 0x18e   : > { %v2644_v25 = vmul.f32 %v2633_v20, %v538_v11  ;;  %v699_v56 = vadd.f32 %v688_v37, %v687_v28  ;;  %v843_v37 = vld [vmem:[%s2721_s22 + $0x8] sm:$0xff] }
 0x18f   : > { %v690_v33 = vmul.f32 %v2641_v24, %v2641_v24 }
 0x190   : > { %v542_v14 = vpop.f32.mrb[4].mxu1  ;;  %v691_v34 = vmul.f32 %v2644_v25, %v2644_v25  ;;  %v672_v36 = vadd.f32 %v2644_v25, %v2641_v24 }
 0x191   : > { %v544_v16 = vpop.f32.mrb[5].mxu1  ;;  %v2652_v29 = vmul.f32 %v2631_v17, %v542_v14 }
 0x192   : > { %v2655_v30 = vmul.f32 %v2633_v20, %v544_v16  ;;  %v704_v52 = vadd.f32 %v691_v34, %v690_v33 }
 0x193   : > { %v693_v45 = vmul.f32 %v2652_v29, %v2652_v29 }
 0x194   : > { %v548_v19 = vpop.f32.mrb[6].mxu1  ;;  %v694_v46 = vmul.f32 %v2655_v30, %v2655_v30  ;;  %v677_v7 = vadd.f32 %v2655_v30, %v2652_v29 }
 0x195   : > { %v550_v21 = vpop.f32.mrb[7].mxu1  ;;  %v2694_v54 = vmul.f32 %v2631_v17, %v548_v19 }
 0x196   : > { %v2697_v55 = vmul.f32 %v2633_v20, %v550_v21  ;;  %v709_v60 = vadd.f32 %v694_v46, %v693_v45  ;;  %v1093_v46 = vld [vmem:[%s2721_s22 + $0x28] sm:$0xff] }
 0x197   : > { %v696_v5 = vmul.f32 %v2694_v54, %v2694_v54 }
 0x198   : > { %v682_v0 = vadd.f32 %v2697_v55, %v2694_v54  ;;  %v697_v6 = vmul.f32 %v2697_v55, %v2697_v55 }
 0x19a   : > { %v2033_v27 = vpop.f32.mrb[8].mxu1  ;;  %v714_v10 = vadd.f32 %v697_v6, %v696_v5 }
 0x19b   : > { %v2658_v31 = vmul.f32 %v2033_v27, %v2638_v23  ;;  %v619_v32 = vpop.f32.mrb[9].mxu1 }
 0x19c   : > { %v2665_v35 = vmul.f32 %v2638_v23, %v619_v32 }
 0x19d   : > { %v673_v38 = vsel %vm250_vm0, %v2658_v31, 0.0  ;;  %v692_v40 = vmul.f32 %v2658_v31, %v2658_v31 }
 0x19e   : > { %v2036_v41 = vpop.f32.mrb[10].mxu1  ;;  %v674_v42 = vadd.f32 %v673_v38, %v672_v36  ;;  %v668_v43 = vsel %vm250_vm0, %v2665_v35, 0.0  ;;  %v689_v44 = vmul.f32 %v2665_v35, %v2665_v35  ;;  %v844_v38 = vld [vmem:[%s2721_s22 + $0x10] sm:$0xff] }
 0x19f   : > { %v629_v47 = vpop.f32.mrb[11].mxu1  ;;  %v669_v48 = vadd.f32 %v668_v43, %v667_v39  ;;  %v705_v49 = vsel %vm250_vm0, %v692_v40, 0.0  ;;  %v2687_v50 = vmul.f32 %v2036_v41, %v2638_v23  ;;  %v2187_v43 = vpack.i.bf16 %v844_v38, %v843_v37  ;;  %v942_v37 = vld [vmem:[%s2721_s22] sm:$0xff] }
 0x1a0   : > { %v2690_v51 = vmul.f32 %v2638_v23, %v629_v47  ;;  %675 = vadd.xlane.f32.xlu1 %v674_v42  ;;  %v700_v53 = vsel %vm250_vm0, %v689_v44, 0.0  ;;  %v706_v57 = vadd.f32 %v705_v49, %v704_v52  ;;  %v1094_v47 = vld [vmem:[%s2721_s22 + $0x30] sm:$0xff] }
 0x1a1   : > { %670 = vadd.xlane.f32.xlu0 %v669_v48  ;;  %v701_v59 = vadd.f32 %v700_v53, %v699_v56  ;;  %v683_v62 = vsel %vm250_vm0, %v2687_v50, 0.0  ;;  %v698_v4 = vmul.f32 %v2687_v50, %v2687_v50  ;;  %v2212_v48 = vpack.i.bf16 %v1094_v47, %v1093_v46  ;;  %v1294_v52 = vld [vmem:[%s2721_s22 + $0x50] sm:$0xff]  ;;  %v1295_v53 = vld [vmem:[%s2721_s22 + $0x58] sm:$0xff] }
 0x1a2   : > { %v695_v58 = vmul.f32 %v2690_v51, %v2690_v51  ;;  %v684_v1 = vadd.f32 %v683_v62, %v682_v0  ;;  %v678_v2 = vsel %vm250_vm0, %v2690_v51, 0.0  ;;  %v2237_v56 = vpack.i.bf16 %v1295_v53, %v1294_v52  ;;  %v1457_v62 = vld [vmem:[%s2721_s22 + $0x78] sm:$0xff] }
 0x1a3   : > { %v679_v8 = vadd.f32 %v678_v2, %v677_v7  ;;  %v715_v9 = vsel %vm250_vm0, %v698_v4, 0.0 }
 0x1a4   : > { %707 = vadd.xlane.f32.xlu1 %v706_v57  ;;  %v710_v61 = vsel %vm250_vm0, %v695_v58, 0.0  ;;  %v716_v11 = vadd.f32 %v715_v9, %v714_v10  ;;  %v845_v57 = vld [vmem:[%s2721_s22 + $0x18] sm:$0xff] }
 0x1a5   : > { %702 = vadd.xlane.f32.xlu0 %v701_v59  ;;  %v711_v63 = vadd.f32 %v710_v61, %v709_v60  ;;  %v2232_v58 = vpack.i.bf16 %v845_v57, %v2504_v3  ;;  %v1045_v59 = vld [vmem:[%s2721_s22 + $0x38] sm:$0xff]  ;;  %v1456_v61 = vld [vmem:[%s2721_s22 + $0x70] sm:$0xff] }
 0x1a6   : > { %v2267_v60 = vpack.i.bf16 %v1045_v59, %v2504_v3 }
 0x1a8   : > { %712 = vadd.xlane.f32.xlu1 %v711_v63  ;;  %v2272_v63 = vpack.i.bf16 %v1457_v62, %v1456_v61 }
 0x1a9   : > { %685 = vadd.xlane.f32.xlu0 %v684_v1 }
 0x1ad   : > { %680 = vadd.xlane.f32.xlu0 %v679_v8 }
 0x1b1   : > { %717 = vadd.xlane.f32.xlu0 %v716_v11 }
 0x22d   : > { %v676_v13 = vpop.xlane.xlu1 %675 }
 0x22e   : > { %v671_v14 = vpop.xlane.xlu0 %670 }
 0x22f   : > { %v719_v19 = vadd.f32 %v676_v13, %v671_v14 }
 0x231   : > { %v708_v16 = vpop.xlane.xlu1 %707 }
 0x232   : > { %v703_v15 = vpop.xlane.xlu0 %702 }
 0x233   : > { %v722_v21 = vadd.f32 %v708_v16, %v703_v15 }
 0x235   : > { %v713_v27 = vpop.xlane.xlu1 %712 }
 0x236   : > { %v686_v18 = vpop.xlane.xlu0 %685  ;;  %v723_v33 = vadd.f32 %v722_v21, %v713_v27 }
 0x23a   : > { %v681_v28 = vpop.xlane.xlu0 %680 }
 0x23b   : > { %v720_v32 = vadd.f32 %v719_v19, %v681_v28 }
 0x23d   : > { %v721_v34 = vadd.f32 %v720_v32, %v686_v18 }
 0x23e   : > { %v718_v36 = vpop.xlane.xlu0 %717 }
 0x23f   : > { %v725_v39 = vmul.f32 0.0009765625, %v721_v34  ;;  %v724_v40 = vadd.f32 %v723_v33, %v718_v36 }
 0x241   : > { %v727_v41 = vmul.f32 %v725_v39, %v725_v39  ;;  %v726_v42 = vmul.f32 0.0009765625, %v724_v40  ;;  %733 = vperm.xlu1 %2185, %v725_v39  }
 0x243   : > { %v728_v44 = vsub.f32 %v726_v42, %v727_v41 }
 0x245   : > { %v729_v45 = vadd.f32 1e-05, %v728_v44  ;;  %2188 = vrot.lane.b32.xlu1 %v2187_v43, %s2500_s27 }
 0x247   : > { %2487 = vrsqrt.f32 %v729_v45 }
 0x249   : > { %2193 = vrot.lane.b32.xlu1 %v2187_v43, %s2501_s28 }
 0x24d   : > { %2198 = vrot.lane.b32.xlu1 %v2187_v43, %s2503_s30 }
 0x251   : > { %v2488_v49 = vpop.eup %2487  ;;  %2208 = vrot.lane.b32.xlu1 %v2212_v48, %s2499_s26 }
 0x252   : > { %750 = vperm.xlu0 %2186, %v2488_v49  }
 0x255   : > { %2218 = vrot.lane.b32.xlu1 %v2212_v48, %s2502_s29 }
 0x256   : > { %2203 = vrot.lane.b32.xlu0 %v2187_v43, %s2505_s6 }
 0x259   : > { %2228 = vrot.lane.b32.xlu1 %v2237_v56, %s2497_s24 }
 0x25a   : > { %2213 = vrot.lane.b32.xlu0 %v2212_v48, %s2500_s27 }
 0x25d   : > { %2243 = vrot.lane.b32.xlu1 %v2232_v58, %s2501_s28 }
 0x25e   : > { %2223 = vrot.lane.b32.xlu0 %v2212_v48, %s2503_s30 }
 0x261   : > { %2248 = vrot.lane.b32.xlu1 %v2237_v56, %s2500_s27 }
 0x262   : > { %2233 = vrot.lane.b32.xlu0 %v2232_v58, %s2500_s27 }
 0x265   : > { %2263 = vrot.lane.b32.xlu1 %v2232_v58, %s2505_s6 }
 0x266   : > { %2238 = vrot.lane.b32.xlu0 %v2237_v56, %s2498_s25 }
 0x269   : > { %2278 = vrot.lane.b32.xlu1 %v2267_v60, %s2500_s27 }
 0x26a   : > { %2253 = vrot.lane.b32.xlu0 %v2232_v58, %s2503_s30 }
 0x26d   : > { %2283 = vrot.lane.b32.xlu1 %v2272_v63, %s2499_s26 }
 0x26e   : > { %2258 = vrot.lane.b32.xlu0 %v2237_v56, %s2501_s28 }
 0x271   : > { %2298 = vrot.lane.b32.xlu1 %v2267_v60, %s2503_s30 }
 0x272   : > { %2268 = vrot.lane.b32.xlu0 %v2267_v60, %s2499_s26 }
 0x276   : > { %2273 = vrot.lane.b32.xlu0 %v2272_v63, %s2497_s24 }
 0x27a   : > { %2288 = vrot.lane.b32.xlu0 %v2267_v60, %s2502_s29 }
 0x27e   : > { %2293 = vrot.lane.b32.xlu0 %v2272_v63, %s2500_s27 }
 0x2c0   : > { %v734_v0 = vpop.permute.xlu1 %733 }
 0x2c1   : > { %v736_v5 = vsub.f32 %v2636_v22, %v734_v0  ;;  %v737_v6 = vsub.f32 %v2647_v26, %v734_v0  ;;  %v738_v7 = vsub.f32 %v2665_v35, %v734_v0  ;;  %v739_v8 = vsub.f32 %v2641_v24, %v734_v0 }
 0x2c2   : > { %v740_v9 = vsub.f32 %v2644_v25, %v734_v0  ;;  %v741_v10 = vsub.f32 %v2658_v31, %v734_v0  ;;  %v744_v11 = vsub.f32 %v2690_v51, %v734_v0  ;;  %v747_v12 = vsub.f32 %v2687_v50, %v734_v0 }
 0x2c3   : > { %v742_v14 = vsub.f32 %v2652_v29, %v734_v0  ;;  %v743_v22 = vsub.f32 %v2655_v30, %v734_v0  ;;  %v745_v26 = vsub.f32 %v2694_v54, %v734_v0  ;;  %v746_v35 = vsub.f32 %v2697_v55, %v734_v0 }
 0x2c4   : > { %v2758_v1 = vpop.permute.xlu1 %2188 }
 0x2c8   : > { %v2760_v2 = vpop.permute.xlu1 %2193 }
 0x2cc   : > { %v2762_v4 = vpop.permute.xlu1 %2198 }
 0x2d0   : > { %v2772_v13 = vpop.permute.xlu1 %2208 }
 0x2d1   : > { %v751_v15 = vpop.permute.xlu0 %750 }
 0x2d2   : > { %v755_v24 = vmul.f32 %v751_v15, %v738_v7  ;;  %v758_v16 = vmul.f32 %v751_v15, %v741_v10  ;;  %v761_v25 = vmul.f32 %v751_v15, %v744_v11  ;;  %v764_v18 = vmul.f32 %v751_v15, %v747_v12  ;;  %v1042_v11 = vld [vmem:[%s2721_s22 + $0x20] sm:$0xff] }
 0x2d3   : > { %v754_v31 = vmul.f32 %v751_v15, %v737_v6  ;;  %v753_v51 = vmul.f32 %v751_v15, %v736_v5  ;;  %v757_v19 = vmul.f32 %v751_v15, %v740_v9  ;;  %v756_v50 = vmul.f32 %v751_v15, %v739_v8  ;;  %v2813_v9 = vld [vmem:[%s2721_s22 + $0x68] sm:$0xff]  ;;  %v2819_v12 = vld [vmem:[%s2721_s22 + $0x60] sm:$0xff] }
 0x2d4   : > { %v767_v21 = vmax.f32 %v755_v24, 0.0  ;;  %v770_v27 = vmax.f32 %v758_v16, 0.0  ;;  %v773_v28 = vmax.f32 %v761_v25, 0.0  ;;  %v776_v29 = vmax.f32 %v764_v18, 0.0  ;;  %v2778_v32 = vpop.permute.xlu1 %2218 }
 0x2d5   : > { %v766_v30 = vmax.f32 %v754_v31, 0.0  ;;  %v765_v54 = vmax.f32 %v753_v51, 0.0  ;;  %v769_v33 = vmax.f32 %v757_v19, 0.0  ;;  %v768_v55 = vmax.f32 %v756_v50, 0.0  ;;  %v2780_v34 = vpop.permute.xlu0 %2203 }
 0x2d6   : > { %v779_v36 = vmul.f32 %v767_v21, %v2638_v23  ;;  %v782_v38 = vmul.f32 %v770_v27, %v2638_v23  ;;  %v785_v39 = vmul.f32 %v773_v28, %v2638_v23  ;;  %v759_v40 = vmul.f32 %v751_v15, %v742_v14  ;;  %v1242_v28 = vld [vmem:[%s2721_s22 + $0x40] sm:$0xff] }
 0x2d7   : > { %v778_v41 = vmul.f32 %v766_v30, %v2633_v20  ;;  %v777_v42 = vmul.f32 %v765_v54, %v2631_v17  ;;  %v781_v43 = vmul.f32 %v769_v33, %v2633_v20  ;;  %v780_v44 = vmul.f32 %v768_v55, %v2631_v17  ;;  %v1293_v54 = vld [vmem:[%s2721_s22 + $0x48] sm:$0xff] }
 0x2d8   : > { %807 = vst.msk [vmem:[#allocation3 + $0x10] sm:$0xff] %vm250_vm0, %v779_v36  ;;  %810 = vst.msk [vmem:[#allocation3 + $0x30] sm:$0xff] %vm250_vm0, %v782_v38  ;;  %v771_v45 = vmax.f32 %v759_v40, 0.0  ;;  %v760_v46 = vmul.f32 %v751_v15, %v743_v22  ;;  %v763_v47 = vmul.f32 %v751_v15, %v746_v35  ;;  %v788_v48 = vmul.f32 %v776_v29, %v2638_v23  ;;  %v2794_v49 = vpop.permute.xlu1 %2228 }
 0x2d9   : > { %813 = vst.msk [vmem:[#allocation3 + $0x50] sm:$0xff] %vm250_vm0, %v785_v39  ;;  %v2327_v52 = vpack.i.bf16 %v942_v37, %v777_v42  ;;  %v2796_v53 = vpop.permute.xlu0 %2213  ;;  %v762_v59 = vmul.f32 %v751_v15, %v745_v26  ;;  %v2347_v22 = vpack.i.bf16 %v1042_v11, %v780_v44  ;;  %v3242_v36 = vunpack.i.h.bf16 %v2778_v32 }
 0x2da   : > { %v783_v56 = vmul.f32 %v771_v45, %v2631_v17  ;;  %v772_v57 = vmax.f32 %v760_v46, 0.0  ;;  %v775_v58 = vmax.f32 %v763_v47, 0.0  ;;  %816 = vst.msk [vmem:[#allocation3 + $0x70] sm:$0xff] %vm250_vm0, %v788_v48  ;;  %v2216_v16 = vunpack.i.h.bf16 %v2796_v53 }
 0x2db   : > { %2328 = vrot.lane.b32.xlu0 %v2327_v52, %s2503_s30  ;;  %v774_v61 = vmax.f32 %v762_v59, 0.0  ;;  %v2191_v48 = vunpack.i.h.bf16 %v2758_v1 }
 0x2dc   : > { %v784_v60 = vmul.f32 %v772_v57, %v2633_v20  ;;  %v2803_v23 = vmul.f32 %v775_v58, %v2633_v20  ;;  %v2805_v62 = vpop.permute.xlu1 %2243  ;;  %v2392_v30 = vpack.i.bf16 %v1242_v28, %v783_v56 }
 0x2dd   : > { %v2807_v63 = vpop.permute.xlu0 %2223  ;;  %v2810_v0 = vmul.f32 %v774_v61, %v2631_v17  ;;  %v2206_v17 = vunpack.i.h.bf16 %v2780_v34 }
 0x2de   : > { %v2402_v55 = vpack.i.bf16 %v1293_v54, %v784_v60  ;;  %v2447_v40 = vpack.i.bf16 %v2813_v9, %v2803_v23 }
 0x2df   : > { %v819_v5 = vld [vmem:[#allocation3 + $0x10] sm:$0xff] }
 0x2e0   : > { %v1019_v6 = vld [vmem:[#allocation3 + $0x30] sm:$0xff]  ;;  %v2302_v7 = vpack.i.bf16 %v819_v5, %v778_v41  ;;  %v2815_v10 = vpop.permute.xlu1 %2248 }
 0x2e1   : > { %v2342_v8 = vpack.i.bf16 %v1019_v6, %v781_v43  ;;  %v2821_v20 = vpop.permute.xlu0 %2233  ;;  %v1219_v50 = vld [vmem:[#allocation3 + $0x50] sm:$0xff]  ;;  %v2467_v43 = vpack.i.bf16 %v2819_v12, %v2810_v0 }
 0x2e2   : > { %2303 = vrot.lane.b32.xlu1 %v2302_v7, %s2500_s27  ;;  %v2382_v27 = vpack.i.bf16 %v2504_v3, %v1219_v50  ;;  %v2889_v41 = vld [vmem:[#allocation3 + $0x70] sm:$0xff] }
 0x2e3   : > { %2343 = vrot.lane.b32.xlu0 %v2342_v8, %s2499_s26  ;;  %v2457_v42 = vpack.i.bf16 %v2504_v3, %v2889_v41  ;;  %v1580_v3 = vld [vmem:[%s3235_s3 + $0x8] sm:$0xff] }
 0x2e4   : > { %v2828_v26 = vpop.permute.xlu1 %2263  ;;  %1836 = vmatprep.mubr.f32.mxu1 %v1580_v3  ;;  %1747 = vmatprep.mubr.f32.mxu0 %v1580_v3 }
 0x2e5   : > { %v2832_v15 = vpop.permute.xlu0 %2238  ;;  %v2266_v24 = vunpack.i.h.bf16 %v2828_v26 }
 0x2e6   : > { %2308 = vrot.lane.b32.xlu1 %v2327_v52, %s2500_s27 }
 0x2e7   : > { %2348 = vrot.lane.b32.xlu0 %v2347_v22, %s2499_s26  ;;  %v2841_v25 = vsel %vm411_vm8, %v2206_v17, %v2266_v24  ;;  %v2195_v24 = vunpack.i.l.bf16 %v2760_v2 }
 0x2e8   : > { %v2843_v18 = vpop.permute.xlu1 %2278 }
 0x2e9   : > { %v2845_v31 = vpop.permute.xlu0 %2253  ;;  %v2281_v51 = vunpack.i.h.bf16 %v2843_v18 }
 0x2ea   : > { %2313 = vrot.lane.b32.xlu1 %v2302_v7, %s2501_s28 }
 0x2eb   : > { %2363 = vrot.lane.b32.xlu0 %v2342_v8, %s2502_s29  ;;  %v2853_v19 = vsel %vm327_vm4, %v2216_v16, %v2281_v51 }
 0x2ec   : > { %v2914_v44 = vpop.permute.xlu1 %2283 }
 0x2ed   : > { %v2855_v21 = vpop.permute.xlu0 %2258 }
 0x2ee   : > { %2318 = vrot.lane.b32.xlu1 %v2327_v52, %s2501_s28 }
 0x2ef   : > { %2368 = vrot.lane.b32.xlu0 %v2347_v22, %s2502_s29 }
 0x2f0   : > { %v2918_v46 = vpop.permute.xlu1 %2298 }
 0x2f1   : > { %v2861_v29 = vpop.permute.xlu0 %2268 }
 0x2f2   : > { %2323 = vrot.lane.b32.xlu1 %v2302_v7, %s2503_s30 }
 0x2f3   : > { %2383 = vrot.lane.b32.xlu0 %v2382_v27, %s2497_s24 }
 0x2f5   : > { %v2866_v33 = vpop.permute.xlu0 %2273 }
 0x2f6   : > { %2333 = vrot.lane.b32.xlu1 %v2302_v7, %s2505_s6 }
 0x2f7   : > { %2393 = vrot.lane.b32.xlu0 %v2392_v30, %s2497_s24 }
 0x2f9   : > { %v2871_v37 = vpop.permute.xlu0 %2288 }
 0x2fa   : > { %2338 = vrot.lane.b32.xlu1 %v2327_v52, %s2505_s6  ;;  %v2291_v38 = vunpack.i.h.bf16 %v2871_v37  ;;  %v2190_v52 = vunpack.i.l.bf16 %v2758_v1  ;;  %v2290_v1 = vunpack.i.l.bf16 %v2871_v37 }
 0x2fb   : > { %2403 = vrot.lane.b32.xlu0 %v2402_v55, %s2498_s25 }
 0x2fc   : > { %v2879_v39 = vsel %vm369_vm6, %v3242_v36, %v2291_v38  ;;  %v859_v61 = vsel %vm327_vm4, %v2190_v52, %v2191_v48  ;;  %v2211_v36 = vunpack.i.h.bf16 %v2772_v13 }
 0x2fd   : > { %v2916_v45 = vpop.permute.xlu0 %2293 }
 0x2fe   : > { %2353 = vrot.lane.b32.xlu1 %v2342_v8, %s2500_s27 }
 0x2ff   : > { %2413 = vrot.lane.b32.xlu0 %v2382_v27, %s2500_s27 }
 0x302   : > { %2358 = vrot.lane.b32.xlu1 %v2347_v22, %s2500_s27 }
 0x303   : > { %2423 = vrot.lane.b32.xlu0 %v2392_v30, %s2500_s27 }
 0x306   : > { %2373 = vrot.lane.b32.xlu1 %v2342_v8, %s2503_s30 }
 0x307   : > { %2433 = vrot.lane.b32.xlu0 %v2402_v55, %s2501_s28 }
 0x30a   : > { %2378 = vrot.lane.b32.xlu1 %v2347_v22, %s2503_s30  ;;  %v3239_v22 = vunpack.i.h.bf16 %v2760_v2 }
 0x30b   : > { %2448 = vrot.lane.b32.xlu0 %v2447_v40, %s2497_s24 }
 0x30c   : > { %v909_v37 = vsel %vm348_vm5, %v2195_v24, %v3239_v22 }
 0x30e   : > { %2388 = vrot.lane.b32.xlu1 %v2402_v55, %s2497_s24 }
 0x30f   : > { %2458 = vrot.lane.b32.xlu0 %v2457_v42, %s2499_s26 }
 0x312   : > { %2398 = vrot.lane.b32.xlu1 %v2382_v27, %s2498_s25 }
 0x313   : > { %2468 = vrot.lane.b32.xlu0 %v2467_v43, %s2499_s26 }
 0x316   : > { %2408 = vrot.lane.b32.xlu1 %v2392_v30, %s2498_s25 }
 0x317   : > { %2478 = vrot.lane.b32.xlu0 %v2447_v40, %s2500_s27 }
 0x31a   : > { %2418 = vrot.lane.b32.xlu1 %v2402_v55, %s2500_s27 }
 0x31e   : > { %2428 = vrot.lane.b32.xlu1 %v2382_v27, %s2501_s28 }
 0x322   : > { %2438 = vrot.lane.b32.xlu1 %v2392_v30, %s2501_s28 }
 0x326   : > { %2443 = vrot.lane.b32.xlu1 %v2457_v42, %s2497_s24 }
 0x32a   : > { %2453 = vrot.lane.b32.xlu1 %v2467_v43, %s2497_s24 }
 0x32e   : > { %2463 = vrot.lane.b32.xlu1 %v2447_v40, %s2499_s26  ;;  %v3238_v40 = vunpack.i.h.bf16 %v2762_v4 }
 0x332   : > { %2473 = vrot.lane.b32.xlu1 %v2457_v42, %s2500_s27  ;;  %v2200_v42 = vunpack.i.l.bf16 %v2762_v4 }
 0x336   : > { %2483 = vrot.lane.b32.xlu1 %v2467_v43, %s2500_s27 }
 0x34d   : > { %v2920_v47 = vpop.permute.xlu0 %2328 }
 0x354   : > { %v2304_v56 = vpop.permute.xlu1 %2303 }
 0x355   : > { %v2924_v57 = vpop.permute.xlu0 %2343  ;;  %v2306_v58 = vunpack.i.h.bf16 %v2304_v56  ;;  %v2305_v59 = vunpack.i.l.bf16 %v2304_v56 }
 0x357   : > { %v834_v60 = vsel %vm327_vm4, %v2305_v59, %v2306_v58 }
 0x358   : > { %v2309_v5 = vpop.permute.xlu1 %2308  ;;  %v2069_v6 = vpack.c.bf16 %v859_v61, %v834_v60 }
 0x359   : > { %v2928_v7 = vpop.permute.xlu0 %2348  ;;  %v2311_v8 = vunpack.i.h.bf16 %v2309_v5  ;;  %v2310_v11 = vunpack.i.l.bf16 %v2309_v5 }
 0x35a   : > { %2070 = vmatprep.subr.bf16.mxu0 %v2069_v6  ;;  %v2236_v6 = vunpack.i.h.bf16 %v2821_v20 }
 0x35b   : > { %v833_v51 = vsel %vm327_vm4, %v2310_v11, %v2305_v59  ;;  %v858_v50 = vsel %vm327_vm4, %v2311_v8, %v2190_v52  ;;  %v2231_v8 = vunpack.i.h.bf16 %v2794_v49  ;;  %v3241_v11 = vunpack.i.l.bf16 %v2794_v49 }
 0x35c   : > { %v2935_v27 = vpop.permute.xlu1 %2313  ;;  %v2071_v28 = vpack.c.bf16 %v858_v50, %v833_v51 }
 0x35d   : > { %v2937_v30 = vpop.permute.xlu0 %2363  ;;  %v3240_v54 = vunpack.i.h.bf16 %v2935_v27  ;;  %v2315_v55 = vunpack.i.l.bf16 %v2935_v27 }
 0x35e   : > { %v2366_v38 = vunpack.i.h.bf16 %v2937_v30  ;;  %2072 = vmatpush1.bf16.msra.mxu0 %v2071_v28  ;;  %v959_v28 = vsel %vm390_vm7, %v2200_v42, %v3238_v40 }
 0x35f   : > { %v884_v3 = vsel %vm348_vm5, %v2315_v55, %v3240_v54 }
 0x360   : > { %v2950_v43 = vsel %vm369_vm6, %v2366_v38, %v2290_v1  ;;  %v2319_v52 = vpop.permute.xlu1 %2318  ;;  %v2073_v59 = vpack.c.bf16 %v909_v37, %v884_v3  ;;  %v2331_v1 = vunpack.i.h.bf16 %v2920_v47  ;;  %v2205_v37 = vunpack.i.l.bf16 %v2780_v34 }
 0x361   : > { %v2957_v60 = vpop.permute.xlu0 %2368  ;;  %v2321_v61 = vunpack.i.h.bf16 %v2319_v52  ;;  %v2320_v5 = vunpack.i.l.bf16 %v2319_v52  ;;  %v2235_v3 = vunpack.i.l.bf16 %v2821_v20  ;;  %v2330_v52 = vunpack.i.l.bf16 %v2920_v47 }
 0x362   : > { %2074 = vmatprep.subr.bf16.mxu0 %v2073_v59  ;;  %v958_v20 = vsel %vm390_vm7, %v2331_v1, %v2200_v42  ;;  %v1260_v47 = vsel %vm264_vm1, %v3241_v11, %v2231_v8  ;;  %v2265_v8 = vunpack.i.l.bf16 %v2828_v26  ;;  %v2215_v34 = vunpack.i.l.bf16 %v2796_v53 }
 0x363   : > { %v883_v51 = vsel %vm348_vm5, %v2320_v5, %v2315_v55  ;;  %v908_v50 = vsel %vm348_vm5, %v2321_v61, %v2195_v24  ;;  %v860_v5 = vsel %vm327_vm4, %v2191_v48, %v2236_v6  ;;  %v835_v40 = vsel %vm327_vm4, %v2306_v58, %v2235_v3 }
 0x364   : > { %v2971_v56 = vpop.permute.xlu1 %2323  ;;  %v2075_v35 = vpack.c.bf16 %v908_v50, %v883_v51  ;;  %v2346_v51 = vunpack.i.h.bf16 %v2924_v57  ;;  %v2135_v3 = vpack.c.bf16 %v860_v5, %v835_v40 }
 0x365   : > { %v2973_v14 = vpop.permute.xlu0 %2383  ;;  %v2326_v59 = vunpack.i.h.bf16 %v2971_v56  ;;  %v2325_v55 = vunpack.i.l.bf16 %v2971_v56 }
 0x366   : > { %v2386_v24 = vunpack.i.h.bf16 %v2973_v14  ;;  %v2385_v61 = vunpack.i.l.bf16 %v2973_v14  ;;  %2076 = vmatpush1.bf16.msra.mxu0 %v2075_v35  ;;  %v2345_v35 = vunpack.i.l.bf16 %v2924_v57 }
 0x367   : > { %v934_v50 = vsel %vm390_vm7, %v2325_v55, %v2326_v59  ;;  %v933_v22 = vsel %vm390_vm7, %v2330_v52, %v2325_v55  ;;  %v2210_v52 = vunpack.i.l.bf16 %v2772_v13 }
 0x368   : > { %v1235_v48 = vsel %vm264_vm1, %v2385_v61, %v2386_v24  ;;  %v2334_v58 = vpop.permute.xlu1 %2333  ;;  %v2077_v42 = vpack.c.bf16 %v959_v28, %v934_v50  ;;  %v2079_v6 = vpack.c.bf16 %v958_v20, %v933_v22  ;;  %v1009_v22 = vsel %vm411_vm8, %v2205_v37, %v2206_v17 }
 0x369   : > { %v2133_v1 = vpack.c.bf16 %v1260_v47, %v1235_v48  ;;  %v2336_v54 = vunpack.i.h.bf16 %v2334_v58  ;;  %v2335_v11 = vunpack.i.l.bf16 %v2334_v58  ;;  %v1034_v5 = vsel %vm306_vm3, %v2345_v35, %v2346_v51  ;;  %v3012_v17 = vpop.permute.xlu0 %2393 }
 0x36a   : > { %2078 = vmatprep.subr.bf16.mxu0 %v2077_v42  ;;  %v2351_v20 = vunpack.i.h.bf16 %v2928_v7  ;;  %v2350_v47 = vunpack.i.l.bf16 %v2928_v7  ;;  %v1059_v42 = vsel %vm306_vm3, %v2210_v52, %v2211_v36 }
 0x36b   : > { %2134 = vmatprep.subr.bf16.mxu1 %v2133_v1  ;;  %v2998_v55 = vsel %vm411_vm8, %v2336_v54, %v2265_v8  ;;  %2080 = vmatpush1.bf16.msra.mxu0 %v2079_v6  ;;  %v984_v24 = vsel %vm411_vm8, %v2335_v11, %v2336_v54  ;;  %v2280_v6 = vunpack.i.l.bf16 %v2843_v18  ;;  %v2365_v1 = vunpack.i.l.bf16 %v2937_v30 }
 0x36c   : > { %2136 = vmatpush3.bf16.msra.mxu1 %v2135_v3  ;;  %v2147_v26 = vpack.c.bf16 %v2841_v25, %v2998_v55  ;;  %v2339_v40 = vpop.permute.xlu1 %2338  ;;  %v2081_v28 = vpack.c.bf16 %v1009_v22, %v984_v24  ;;  %v2085_v3 = vpack.c.bf16 %v1059_v42, %v1034_v5 }
 0x36d   : > { %v2341_v50 = vunpack.i.h.bf16 %v2339_v40  ;;  %v2340_v54 = vunpack.i.l.bf16 %v2339_v40  ;;  %v1033_v40 = vsel %vm306_vm3, %v2350_v47, %v2345_v35 }
 0x36e   : > { %2082 = vmatprep.subr.bf16.mxu0 %v2081_v28  ;;  %v1058_v28 = vsel %vm306_vm3, %v2351_v20, %v2210_v52  ;;  %v1134_v52 = vsel %vm369_vm6, %v2365_v1, %v2366_v38  ;;  %v2371_v20 = vunpack.i.h.bf16 %v2957_v60  ;;  %v3243_v38 = vunpack.i.h.bf16 %v2778_v32 }
 0x36f   : > { %v983_v48 = vsel %vm411_vm8, %v2340_v54, %v2335_v11  ;;  %v1008_v58 = vsel %vm411_vm8, %v2341_v50, %v2205_v37  ;;  %v2220_v11 = vunpack.i.l.bf16 %v2778_v32  ;;  %v1109_v50 = vsel %vm327_vm4, %v2215_v34, %v2216_v16 }
 0x370   : > { %v2354_v7 = vpop.permute.xlu1 %2353  ;;  %v2083_v8 = vpack.c.bf16 %v1008_v58, %v983_v48  ;;  %v2087_v35 = vpack.c.bf16 %v1058_v28, %v1033_v40  ;;  %v2370_v48 = vunpack.i.l.bf16 %v2957_v60  ;;  %v3038_v58 = vpop.permute.xlu0 %2403  ;;  %v2226_v16 = vunpack.i.h.bf16 %v2807_v63 }
 0x371   : > { %v2356_v24 = vunpack.i.h.bf16 %v2354_v7  ;;  %v2355_v22 = vunpack.i.l.bf16 %v2354_v7 }
 0x372   : > { %2084 = vmatpush1.bf16.msra.mxu0 %v2083_v8  ;;  %v1159_v8 = vsel %vm369_vm6, %v2220_v11, %v3243_v38  ;;  %v2396_v38 = vunpack.i.h.bf16 %v3012_v17 }
 0x373   : > { %v3025_v37 = vsel %vm327_vm4, %v2356_v24, %v2280_v6  ;;  %2086 = vmatprep.subr.bf16.mxu0 %v2085_v3  ;;  %v1084_v18 = vsel %vm327_vm4, %v2355_v22, %v2356_v24  ;;  %v2225_v6 = vunpack.i.l.bf16 %v2807_v63  ;;  %v2093_v24 = vpack.c.bf16 %v1159_v8, %v1134_v52 }
 0x374   : > { %v2155_v5 = vpack.c.bf16 %v2853_v19, %v3025_v37  ;;  %v2359_v54 = vpop.permute.xlu1 %2358  ;;  %v2089_v47 = vpack.c.bf16 %v1109_v50, %v1084_v18  ;;  %v1133_v18 = vsel %vm369_vm6, %v2370_v48, %v2365_v1  ;;  %v1158_v50 = vsel %vm369_vm6, %v2371_v20, %v2220_v11 }
 0x375   : > { %v2361_v42 = vunpack.i.h.bf16 %v2359_v54  ;;  %v2360_v53 = vunpack.i.l.bf16 %v2359_v54  ;;  %v2241_v20 = vunpack.i.h.bf16 %v2832_v15  ;;  %v2246_v48 = vunpack.i.h.bf16 %v2805_v62 }
 0x376   : > { %2088 = vmatpush1.bf16.msra.mxu0 %v2087_v35  ;;  %v2095_v35 = vpack.c.bf16 %v1158_v50, %v1133_v18  ;;  %v2395_v8 = vunpack.i.l.bf16 %v3012_v17  ;;  %v3250_v19 = vpack.c.bf16 %v2879_v39, %v2950_v43 }
 0x377   : > { %2090 = vmatprep.subr.bf16.mxu0 %v2089_v47  ;;  %v1083_v7 = vsel %vm327_vm4, %v2360_v53, %v2355_v22  ;;  %v1108_v30 = vsel %vm327_vm4, %v2361_v42, %v2215_v34  ;;  %v3053_v22 = vpop.permute.xlu0 %2413  ;;  %v1209_v34 = vsel %vm390_vm7, %v2225_v6, %v2226_v16  ;;  %v2245_v53 = vunpack.i.l.bf16 %v2805_v62 }
 0x378   : > { %v3047_v3 = vpop.permute.xlu1 %2373  ;;  %v2091_v60 = vpack.c.bf16 %v1108_v30, %v1083_v7  ;;  %v2416_v50 = vunpack.i.h.bf16 %v3053_v22 }
 0x379   : > { %v2376_v40 = vunpack.i.h.bf16 %v3047_v3  ;;  %v2375_v28 = vunpack.i.l.bf16 %v3047_v3 }
 0x37a   : > { %2092 = vmatpush1.bf16.msra.mxu0 %v2091_v60 }
 0x37b   : > { %2094 = vmatprep.subr.bf16.mxu0 %v2093_v24  ;;  %v1184_v32 = vsel %vm390_vm7, %v2375_v28, %v2376_v40  ;;  %v3068_v60 = vpop.permute.xlu0 %2423 }
 0x37c   : > { %v2379_v54 = vpop.permute.xlu1 %2378  ;;  %v2097_v47 = vpack.c.bf16 %v1209_v34, %v1184_v32  ;;  %v2415_v32 = vunpack.i.l.bf16 %v3053_v22  ;;  %v3244_v34 = vunpack.i.l.bf16 %v2794_v49  ;;  %v2255_v49 = vunpack.i.l.bf16 %v2845_v31 }
 0x37d   : > { %v2381_v52 = vunpack.i.h.bf16 %v2379_v54  ;;  %v2380_v42 = vunpack.i.l.bf16 %v2379_v54 }
 0x37e   : > { %2096 = vmatpush1.bf16.msra.mxu0 %v2095_v35 }
 0x37f   : > { %2098 = vmatprep.subr.bf16.mxu0 %v2097_v47  ;;  %v1183_v1 = vsel %vm390_vm7, %v2380_v42, %v2375_v28  ;;  %v1208_v11 = vsel %vm390_vm7, %v2381_v52, %v2225_v6  ;;  %v2240_v28 = vunpack.i.l.bf16 %v2832_v15  ;;  %v2406_v6 = vunpack.i.h.bf16 %v3038_v58 }
 0x380   : > { %v2389_v7 = vpop.permute.xlu1 %2388  ;;  %v2099_v30 = vpack.c.bf16 %v1208_v11, %v1183_v1  ;;  %v2251_v15 = vunpack.i.h.bf16 %v2815_v10  ;;  %v2250_v47 = vunpack.i.l.bf16 %v2815_v10  ;;  %v2405_v1 = vunpack.i.l.bf16 %v3038_v58 }
 0x381   : > { %v2391_v24 = vunpack.i.h.bf16 %v2389_v7  ;;  %v2390_v18 = vunpack.i.l.bf16 %v2389_v7  ;;  %v3245_v7 = vunpack.i.h.bf16 %v2935_v27  ;;  %v1309_v58 = vsel %vm285_vm2, %v2406_v6, %v2240_v28 }
 0x382   : > { %2100 = vmatpush1.bf16.msra.mxu0 %v2099_v30 }
 0x383   : > { %v1234_v62 = vsel %vm264_vm1, %v2390_v18, %v2385_v61  ;;  %v1259_v17 = vsel %vm264_vm1, %v2391_v24, %v3244_v34  ;;  %v1233_v54 = vsel %vm264_vm1, %v2395_v8, %v2390_v18  ;;  %v1258_v35 = vsel %vm264_vm1, %v2396_v38, %v2391_v24  ;;  %v3091_v8 = vpop.permute.xlu0 %2433 }
 0x384   : > { %v2399_v52 = vpop.permute.xlu1 %2398  ;;  %v2101_v42 = vpack.c.bf16 %v1259_v17, %v1234_v62  ;;  %v2103_v22 = vpack.c.bf16 %v1258_v35, %v1233_v54  ;;  %v2256_v61 = vunpack.i.h.bf16 %v2845_v31  ;;  %v885_v30 = vsel %vm348_vm5, %v3245_v7, %v2245_v53 }
 0x385   : > { %v2401_v14 = vunpack.i.h.bf16 %v2399_v52  ;;  %v2400_v11 = vunpack.i.l.bf16 %v2399_v52  ;;  %v1310_v38 = vsel %vm285_vm2, %v2240_v28, %v2241_v20  ;;  %v1335_v18 = vsel %vm327_vm4, %v2415_v32, %v2416_v50 }
 0x386   : > { %2102 = vmatprep.subr.bf16.mxu0 %v2101_v42  ;;  %v3246_v31 = vunpack.i.h.bf16 %v2760_v2  ;;  %v1360_v20 = vsel %vm327_vm4, %v2250_v47, %v2251_v15  ;;  %v935_v54 = vsel %vm390_vm7, %v2326_v59, %v2255_v49  ;;  %v3247_v50 = vunpack.i.h.bf16 %v2762_v4 }
 0x387   : > { %2104 = vmatpush1.bf16.msra.mxu0 %v2103_v22  ;;  %v1284_v10 = vsel %vm285_vm2, %v2405_v1, %v2400_v11  ;;  %v1285_v24 = vsel %vm285_vm2, %v2400_v11, %v2401_v14  ;;  %v2141_v52 = vpack.c.bf16 %v1360_v20, %v1335_v18  ;;  %v2426_v59 = vunpack.i.h.bf16 %v3068_v60  ;;  %v3111_v11 = vpop.permute.xlu0 %2448 }
 0x388   : > { %v910_v27 = vsel %vm348_vm5, %v3246_v31, %v2246_v48  ;;  %v2409_v62 = vpop.permute.xlu1 %2408  ;;  %v2105_v53 = vpack.c.bf16 %v1309_v58, %v1284_v10  ;;  %v2137_v34 = vpack.c.bf16 %v1310_v38, %v1285_v24  ;;  %v960_v2 = vsel %vm390_vm7, %v3247_v50, %v2256_v61 }
 0x389   : > { %v2139_v17 = vpack.c.bf16 %v910_v27, %v885_v30  ;;  %v2411_v35 = vunpack.i.h.bf16 %v2409_v62  ;;  %v2410_v28 = vunpack.i.l.bf16 %v2409_v62  ;;  %v2143_v15 = vpack.c.bf16 %v960_v2, %v935_v54  ;;  %v1425_v62 = vld [vmem:[%s2721_s22 + $0x70] sm:$0xff] }
 0x38a   : > { %2106 = vmatprep.subr.bf16.mxu0 %v2105_v53  ;;  %2138 = vmatprep.subr.bf16.mxu1 %v2137_v34  ;;  %v2425_v14 = vunpack.i.l.bf16 %v3068_v60  ;;  %v2261_v4 = vunpack.i.h.bf16 %v2855_v21  ;;  %v2260_v61 = vunpack.i.l.bf16 %v2855_v21  ;;  %v2435_v18 = vunpack.i.l.bf16 %v3091_v8 }
 0x38b   : > { %2140 = vmatpush3.bf16.msra.mxu1 %v2139_v17  ;;  %v1283_v48 = vsel %vm285_vm2, %v2410_v28, %v2405_v1  ;;  %v1308_v42 = vsel %vm285_vm2, %v2411_v35, %v2406_v6  ;;  %v2436_v1 = vunpack.i.h.bf16 %v3091_v8  ;;  %v2270_v27 = vunpack.i.l.bf16 %v2861_v29  ;;  %v3123_v53 = vpop.permute.xlu0 %2458 }
 0x38c   : > { %v2419_v22 = vpop.permute.xlu1 %2418  ;;  %2142 = vmatprep.subr.bf16.mxu1 %v2141_v52  ;;  %v2107_v56 = vpack.c.bf16 %v1308_v42, %v1283_v48  ;;  %v1410_v20 = vsel %vm348_vm5, %v2260_v61, %v2261_v4  ;;  %v2271_v17 = vunpack.i.h.bf16 %v2861_v29  ;;  %v2149_v50 = vpack.c.bf16 %v1425_v62, %v2889_v41 }
 0x38d   : > { %v2421_v49 = vunpack.i.h.bf16 %v2419_v22  ;;  %v2420_v7 = vunpack.i.l.bf16 %v2419_v22  ;;  %v2276_v2 = vunpack.i.h.bf16 %v2866_v33  ;;  %v2275_v48 = vunpack.i.l.bf16 %v2866_v33 }
 0x38e   : > { %2108 = vmatpush1.bf16.msra.mxu0 %v2107_v56  ;;  %v1035_v42 = vsel %vm306_vm3, %v2346_v51, %v2270_v27  ;;  %v2461_v29 = vunpack.i.h.bf16 %v3123_v53  ;;  %v2460_v22 = vunpack.i.l.bf16 %v3123_v53  ;;  %v1060_v57 = vsel %vm306_vm3, %v2211_v36, %v2271_v17 }
 0x38f   : > { %2144 = vmatpush3.bf16.msra.mxu1 %v2143_v15  ;;  %v1334_v6 = vsel %vm327_vm4, %v2420_v7, %v2415_v32  ;;  %v1359_v30 = vsel %vm327_vm4, %v2421_v49, %v2250_v47  ;;  %v1333_v38 = vsel %vm327_vm4, %v2425_v14, %v2420_v7  ;;  %v1358_v60 = vsel %vm327_vm4, %v2426_v59, %v2421_v49  ;;  %v2469_v25 = vpop.permute.xlu0 %2468 }
 0x390   : > { %v2429_v10 = vpop.permute.xlu1 %2428  ;;  %v2109_v58 = vpack.c.bf16 %v1359_v30, %v1334_v6  ;;  %v2111_v24 = vpack.c.bf16 %v1358_v60, %v1333_v38  ;;  %v1409_v47 = vsel %vm348_vm5, %v2436_v1, %v2260_v61  ;;  %v2451_v15 = vunpack.i.h.bf16 %v3111_v11 }
 0x391   : > { %v2431_v31 = vunpack.i.h.bf16 %v2429_v10  ;;  %v2430_v21 = vunpack.i.l.bf16 %v2429_v10  ;;  %v2286_v51 = vunpack.i.h.bf16 %v2914_v44  ;;  %v2285_v56 = vunpack.i.l.bf16 %v2914_v44 }
 0x392   : > { %2110 = vmatprep.subr.bf16.mxu0 %v2109_v58  ;;  %v2151_v49 = vpack.c.bf16 %v1060_v57, %v1035_v42  ;;  %v2450_v7 = vunpack.i.l.bf16 %v3111_v11  ;;  %v1472_v4 = vsel %vm264_vm1, %v2275_v48, %v2276_v2  ;;  %v1471_v13 = vsel %vm264_vm1, %v2451_v15, %v2275_v48 }
 0x393   : > { %2112 = vmatpush1.bf16.msra.mxu0 %v2111_v24  ;;  %v1384_v32 = vsel %vm348_vm5, %v2435_v18, %v2430_v21  ;;  %v1385_v34 = vsel %vm348_vm5, %v2430_v21, %v2431_v31  ;;  %v3248_v36 = vpack.c.bf16 %v2813_v9, %v2803_v23  ;;  %v1522_v10 = vsel %vm306_vm3, %v2285_v56, %v2286_v51  ;;  %v2479_v9 = vpop.permute.xlu0 %2478  ;;  %v1579_v51 = vld [vmem:[%s3235_s3] sm:$0xff] }
 0x394   : > { %v2439_v8 = vpop.permute.xlu1 %2438  ;;  %v2113_v54 = vpack.c.bf16 %v1409_v47, %v1384_v32  ;;  %v2145_v35 = vpack.c.bf16 %v1410_v20, %v1385_v34  ;;  %v3249_v58 = vpack.c.bf16 %v2819_v12, %v2810_v0  ;;  %v2471_v27 = vunpack.i.h.bf16 %v2469_v25 }
 0x395   : > { %v2441_v28 = vunpack.i.h.bf16 %v2439_v8  ;;  %v2440_v52 = vunpack.i.l.bf16 %v2439_v8  ;;  %v2470_v62 = vunpack.i.l.bf16 %v2469_v25  ;;  %v2296_v12 = vunpack.i.h.bf16 %v2916_v45 }
 0x396   : > { %2114 = vmatprep.subr.bf16.mxu0 %v2113_v54  ;;  %2146 = vmatprep.subr.bf16.mxu1 %v2145_v35  ;;  %v2295_v32 = vunpack.i.l.bf16 %v2916_v45  ;;  %v2481_v47 = vunpack.i.h.bf16 %v2479_v9  ;;  %v2301_v17 = vunpack.i.h.bf16 %v2918_v46  ;;  %v2300_v8 = vunpack.i.l.bf16 %v2918_v46 }
 0x397   : > { %2148 = vmatpush3.bf16.msra.mxu1 %v2147_v26  ;;  %v1383_v41 = vsel %vm348_vm5, %v2440_v52, %v2435_v18  ;;  %v1408_v33 = vsel %vm348_vm5, %v2441_v28, %v2436_v1  ;;  %v1497_v1 = vsel %vm306_vm3, %v2460_v22, %v2461_v29  ;;  %v2480_v28 = vunpack.i.l.bf16 %v2479_v9 }
 0x398   : > { %v2444_v59 = vpop.permute.xlu1 %2443  ;;  %2150 = vmatprep.subr.bf16.mxu1 %v2149_v50  ;;  %v2115_v14 = vpack.c.bf16 %v1408_v33, %v1383_v41  ;;  %v2157_v23 = vpack.c.bf16 %v1522_v10, %v1497_v1  ;;  %v1185_v39 = vsel %vm390_vm7, %v2376_v40, %v2300_v8  ;;  %v1571_v2 = vsel %vm327_vm4, %v2481_v47, %v2295_v32 }
 0x399   : > { %v2446_v55 = vunpack.i.h.bf16 %v2444_v59  ;;  %v2445_v26 = vunpack.i.l.bf16 %v2444_v59  ;;  %v1572_v46 = vsel %vm327_vm4, %v2295_v32, %v2296_v12  ;;  %v1210_v42 = vsel %vm390_vm7, %v2226_v16, %v2301_v17  ;;  %v1582_v16 = vld [vmem:[%s3235_s3 + $0x18] sm:$0xff]  ;;  %v1584_v59 = vld [vmem:[%s3235_s3 + $0x28] sm:$0xff] }
 0x39a   : > { %2116 = vmatpush1.bf16.msra.mxu0 %v2115_v14  ;;  %v2163_v3 = vpack.c.bf16 %v1210_v42, %v1185_v39  ;;  %v1583_v14 = vld [vmem:[%s3235_s3 + $0x20] sm:$0xff] }
 0x39b   : > { %2118 = vmatprep.subr.bf16.mxu0 %v3248_v36  ;;  %2152 = vmatpush3.bf16.msra.mxu1 %v2151_v49  ;;  %v1447_v44 = vsel %vm264_vm1, %v2445_v26, %v2446_v55  ;;  %v1446_v61 = vsel %vm264_vm1, %v2450_v7, %v2445_v26  ;;  %v1586_v49 = vld [vmem:[%s3235_s3 + $0x38] sm:$0xff] }
 0x39c   : > { %v2454_v11 = vpop.permute.xlu1 %2453  ;;  %v2153_v6 = vpack.c.bf16 %v1472_v4, %v1447_v44  ;;  %v2121_v30 = vpack.c.bf16 %v1471_v13, %v1446_v61 }
 0x39d   : > { %v2456_v38 = vunpack.i.h.bf16 %v2454_v11  ;;  %v2455_v60 = vunpack.i.l.bf16 %v2454_v11 }
 0x39e   : > { %2120 = vmatpush1.bf16.msra.mxu0 %v3249_v58  ;;  %2154 = vmatprep.subr.bf16.mxu1 %v2153_v6 }
 0x39f   : > { %2122 = vmatprep.subr.bf16.mxu0 %v2121_v30  ;;  %2156 = vmatpush3.bf16.msra.mxu1 %v2155_v5  ;;  %v1445_v24 = vsel %vm264_vm1, %v2455_v60, %v2450_v7  ;;  %v1470_v18 = vsel %vm264_vm1, %v2456_v38, %v2451_v15  ;;  %v1585_v7 = vld [vmem:[%s3235_s3 + $0x30] sm:$0xff] }
 0x3a0   : > { %v2464_v31 = vpop.permute.xlu1 %2463  ;;  %2158 = vmatprep.subr.bf16.mxu1 %v2157_v23  ;;  %v2123_v21 = vpack.c.bf16 %v1470_v18, %v1445_v24 }
 0x3a1   : > { %v2466_v53 = vunpack.i.h.bf16 %v2464_v31  ;;  %v2465_v0 = vunpack.i.l.bf16 %v2464_v31 }
 0x3a2   : > { %2124 = vmatpush1.bf16.msra.mxu0 %v2123_v21 }
 0x3a3   : > { %2160 = vmatpush3.bf16.msra.mxu1 %v3250_v19  ;;  %v1496_v37 = vsel %vm306_vm3, %v2465_v0, %v2460_v22  ;;  %v1521_v5 = vsel %vm306_vm3, %v2466_v53, %v2285_v56  ;;  %v1495_v34 = vsel %vm306_vm3, %v2470_v62, %v2465_v0  ;;  %v1520_v20 = vsel %vm306_vm3, %v2471_v27, %v2466_v53  ;;  %v1581_v56 = vld [vmem:[%s3235_s3 + $0x10] sm:$0xff] }
 0x3a4   : > { %v2474_v54 = vpop.permute.xlu1 %2473  ;;  %v2125_v45 = vpack.c.bf16 %v1521_v5, %v1496_v37  ;;  %v2127_v35 = vpack.c.bf16 %v1520_v20, %v1495_v34 }
 0x3a5   : > { %v2476_v52 = vunpack.i.h.bf16 %v2474_v54  ;;  %v2475_v50 = vunpack.i.l.bf16 %v2474_v54 }
 0x3a6   : > { %2126 = vmatprep.subr.bf16.mxu0 %v2125_v45 }
 0x3a7   : > { %2128 = vmatpush1.bf16.msra.mxu0 %v2127_v35  ;;  %v1546_v43 = vsel %vm327_vm4, %v2480_v28, %v2475_v50  ;;  %v1547_v48 = vsel %vm327_vm4, %v2475_v50, %v2476_v52 }
 0x3a8   : > { %v2484_v15 = vpop.permute.xlu1 %2483  ;;  %v2129_v29 = vpack.c.bf16 %v1571_v2, %v1546_v43  ;;  %v2161_v22 = vpack.c.bf16 %v1572_v46, %v1547_v48 }
 0x3a9   : > { %v2486_v41 = vunpack.i.h.bf16 %v2484_v15  ;;  %v2485_v40 = vunpack.i.l.bf16 %v2484_v15 }
 0x3aa   : > { %2130 = vmatprep.subr.bf16.mxu0 %v2129_v29  ;;  %2162 = vmatprep.subr.bf16.mxu1 %v2161_v22 }
 0x3ab   : > { %2164 = vmatpush3.bf16.msra.mxu1 %v2163_v3  ;;  %v1545_v33 = vsel %vm327_vm4, %v2485_v40, %v2480_v28  ;;  %v1570_v57 = vsel %vm327_vm4, %v2486_v41, %v2481_v47 }
 0x3ac   : > { %v2131_v63 = vpack.c.bf16 %v1570_v57, %v1545_v33 }
 0x3ae   : > { %2132 = vmatpush1.bf16.msra.mxu0 %v2131_v63  ;;  %1837 = vmatmul.mubr.f32.vlgmr.msra.gmra.mrb[12].mxu1 %v1579_v51 }
 0x3af   : > { %1841 = vmatprep.mubr.f32.mxu1 %v1582_v16 }
 0x3b1   : > { %1748 = vmatmul.mubr.f32.vlgmr.msra.gmra.mrb[0].mxu0 %v1579_v51 }
 0x3b2   : > { %1842 = vmatmul.mubr.f32.gmra.mrb[14].mxu1 %v1581_v56  ;;  %1753 = vmatprep.mubr.f32.mxu0 %v1582_v16 }
 0x3b3   : > { %1846 = vmatprep.mubr.f32.mxu1 %v1584_v59 }
 0x3b5   : > { %1754 = vmatmul.mubr.f32.gmra.mrb[2].mxu0 %v1581_v56 }
 0x3b6   : > { %1847 = vmatmul.mubr.f32.gmra.mrb[16].mxu1 %v1583_v14  ;;  %1759 = vmatprep.mubr.f32.mxu0 %v1584_v59 }
 0x3b7   : > { %1851 = vmatprep.mubr.f32.mxu1 %v1586_v49 }
 0x3b9   : > { %1760 = vmatmul.mubr.f32.gmra.mrb[4].mxu0 %v1583_v14 }
 0x3ba   : > { %1852 = vmatmul.mubr.f32.gmra.mrb[18].mxu1 %v1585_v7  ;;  %1765 = vmatprep.mubr.f32.mxu0 %v1586_v49 }
 0x3bd   : > { %1766 = vmatmul.mubr.f32.gmra.mrb[6].mxu0 %v1585_v7 }
 0x481   : > { %v2001_v25 = vpop.f32.mrb[12].mxu1 }
 0x482   : > { %v2002_v55 = vpop.f32.mrb[13].mxu1 }
 0x483   : > { %v2003_v26 = vadd.f32 %v2002_v55, %v2001_v25 }
 0x484   : > { %v1749_v4 = vpop.f32.mrb[0].mxu0 }
 0x485   : > { %1859 = vst [vmem:[%s3215_s17 + $0x10] sm:$0xff] %v2003_v26  ;;  %1857 = vst [vmem:[%s3215_s17] sm:$0xff] %v1749_v4  ;;  %v1751_v13 = vpop.f32.mrb[1].mxu0  ;;  %v2004_v36 = vpop.f32.mrb[14].mxu1 }
 0x486   : > { %1858 = vst [vmem:[%s3215_s17 + $0x8] sm:$0xff] %v1751_v13  ;;  %v2005_v44 = vpop.f32.mrb[15].mxu1 }
 0x487   : > { %v2006_v61 = vadd.f32 %v2005_v44, %v2004_v36 }
 0x488   : > { %v1755_v1 = vpop.f32.mrb[2].mxu0 }
 0x489   : > { %1862 = vst [vmem:[%s3215_s17 + $0x28] sm:$0xff] %v2006_v61  ;;  %1860 = vst [vmem:[%s3215_s17 + $0x18] sm:$0xff] %v1755_v1  ;;  %v1757_v11 = vpop.f32.mrb[3].mxu0  ;;  %v2007_v6 = vpop.f32.mrb[16].mxu1 }
 0x48a   : > { %1861 = vst [vmem:[%s3215_s17 + $0x20] sm:$0xff] %v1757_v11  ;;  %v2008_v30 = vpop.f32.mrb[17].mxu1 }
 0x48b   : > { %v2009_v38 = vadd.f32 %v2008_v30, %v2007_v6 }
 0x48c   : > { %v1761_v60 = vpop.f32.mrb[4].mxu0 }
 0x48d   : > { %1865 = vst [vmem:[%s3215_s17 + $0x40] sm:$0xff] %v2009_v38  ;;  %1863 = vst [vmem:[%s3215_s17 + $0x30] sm:$0xff] %v1761_v60  ;;  %v1763_v10 = vpop.f32.mrb[5].mxu0  ;;  %v2010_v58 = vpop.f32.mrb[18].mxu1 }
 0x48e   : > { %1864 = vst [vmem:[%s3215_s17 + $0x38] sm:$0xff] %v1763_v10  ;;  %v2011_v23 = vpop.f32.mrb[19].mxu1 }
 0x48f   : > { %v2012_v9 = vadd.f32 %v2011_v23, %v2010_v58 }
 0x490   : > { %v1767_v24 = vpop.f32.mrb[6].mxu0 }
 0x491   : > { %1868 = vst [vmem:[%s3215_s17 + $0x58] sm:$0xff] %v2012_v9  ;;  %1866 = vst [vmem:[%s3215_s17 + $0x48] sm:$0xff] %v1767_v24  ;;  %v1769_v18 = vpop.f32.mrb[7].mxu0 }
 0x492   : > { %1867 = vst [vmem:[%s3215_s17 + $0x50] sm:$0xff] %v1769_v18 }
 0x493 PF: > { %s15_s18 = sadd.s32 1, %s2495_s18  }
 0x494   : > { %p12_p4 = scmp.ge.s32.totalorder %s15_s18, 4  }
 0x496   :  { %14 = sbr.rel (!%p12_p4) target bundleno = 1 (0x1), region = 73 }

</bundles_post_ra>
